<compile_context>
chip_gen: v7x
topology: tpu7x:2x2x1
jax: 0.10.0
libtpu: 0.0.40
codegen_flags: <defaults>
</compile_context>

<pallas_src>
import math

import jax
import jax.numpy as jnp
from jax import lax
from jax.experimental import pallas as pl
from jax.experimental.pallas import tpu as pltpu

EPS = 1e-5      # PyTorch InstanceNorm3d default eps
LANE = 128


def _round_up(x, m):
    return (x + m - 1) // m * m


def _vmem_budget_bytes():
    # Generation-aware budget: ~96 MiB on v5e/v6e (128 MiB), ~48 MiB on v7x (64 MiB).
    cap = 64 * 1024 * 1024
    try:
        cap = int(getattr(pltpu.get_tpu_info(), "vmem_capacity_bytes", cap))
    except Exception:
        pass
    return int(cap * 3 // 4)


def _row_tiling(N, R, K, Cp):
    """Tile the flattened voxel rows: NT = P * T tiles of TR rows, R_pad = NT*TR >= R."""
    budget = _vmem_budget_bytes()
    # Per-row VMEM bytes: packed operand (bf16, double-buffered) + output tile (bf16,
    # double-buffered) + f32 accumulator + f32 stats temporaries.
    bytes_per_row = 4 * K + 4 * Cp + 8 * Cp
    avail = max(budget // 2 - 2 * K * Cp, 2 * 1024 * 1024)
    tr_cap = min(max((avail // bytes_per_row) // 8 * 8, 8), 32768)
    NT = max(-(-R // tr_cap), 1)
    if N == 1 and NT == 1 and R >= 16:
        NT = 2                        # keep both TensorCores busy even at batch 1
    if NT > 1 and NT % 2 == 1:
        NT += 1                       # even tile count -> two parallel row shards
    TR = _round_up(-(-R // NT), 8)
    R_pad = NT * TR
    P = 2 if NT % 2 == 0 else 1
    return TR, NT, P, NT // P, R_pad


# ----------------------------------------------------------------------------
# Kernel 1: tap-packed conv GEMM + streaming InstanceNorm stats.
# ----------------------------------------------------------------------------
def _conv_stats_kernel(a_ref, w_ref, y_ref, stats_ref):
    # a_ref:     (TR, K)  bf16 packed 27-tap operand rows
    # w_ref:     (K, Cp)  bf16 packed weights (resident)
    # y_ref:     (TR, Cp) bf16 pre-norm conv output tile
    # stats_ref: (2, Cp)  f32 running (sum, sum of squares) per (n, shard)
    t = pl.program_id(2)
    acc = jnp.dot(a_ref[...], w_ref[...], preferred_element_type=jnp.float32)
    y_ref[...] = acc.astype(y_ref.dtype)
    s1 = jnp.sum(acc, axis=0, keepdims=True)
    s2 = jnp.sum(acc * acc, axis=0, keepdims=True)
    tile_stats = jnp.concatenate([s1, s2], axis=0)        # (2, Cp)

    @pl.when(t == 0)
    def _():
        stats_ref[...] = tile_stats

    @pl.when(t > 0)
    def _():
        stats_ref[...] = stats_ref[...] + tile_stats


# ----------------------------------------------------------------------------
# Kernel 2: final InstanceNorm (biased variance) + ReLU over row tiles.
# ----------------------------------------------------------------------------
def _norm_relu_kernel(y_ref, inv_ref, shift_ref, o_ref):
    y = y_ref[...].astype(jnp.float32)                    # (TR, Cp)
    o_ref[...] = jnp.maximum(y * inv_ref[...] - shift_ref[...], 0.0).astype(o_ref.dtype)


# ----------------------------------------------------------------------------
# One Conv3d(k=3,s=1,p=1) stage: tap pack -> Pallas GEMM + stats -> mean / inv-std.
# ----------------------------------------------------------------------------
def _conv_in_stage(x_pad, w_torch):
    """x_pad: (N, D+2, H+2, W+2, C) bf16 with a zero spatial border (real channels).
       Returns pre-norm conv output (N, R_pad, Cout_p) bf16, per-(n,c) mean and inv-std,
       and the row-tiling metadata."""
    N, Dp2, Hp2, Wp2, C = x_pad.shape
    D, H, W = Dp2 - 2, Hp2 - 2, Wp2 - 2
    out_ch = int(w_torch.shape[0])
    R = D * H * W
    K = _round_up(27 * C, LANE)
    Cp = _round_up(out_ch, LANE)
    TR, NT, P, T, R_pad = _row_tiling(N, R, K, Cp)

    # 27-tap pack at real channel width (fused XLA gather; small because C is the real
    # channel count, not a 128-padded one).
    # TODO(synk): for large channel counts (27*C >> 512) switch to a halo-slab Pallas
    # kernel with in-VMEM tap packing to avoid the 27x HBM blow-up of this operand.
    cols = []
    for kd in range(3):
        for kh in range(3):
            for kw in range(3):
                cols.append(lax.slice(x_pad, (0, kd, kh, kw, 0),
                                      (N, kd + D, kh + H, kw + W, C)))
    a = jnp.concatenate(cols, axis=-1).reshape(N, R, 27 * C)
    a = jnp.pad(a, ((0, 0), (0, R_pad - R), (0, K - 27 * C)))

    # torch (Cout, Cin, kd, kh, kw) -> (27*Cin, Cout), matching the pack's tap ordering.
    wm = jnp.transpose(w_torch, (2, 3, 4, 1, 0)).reshape(27 * C, out_ch)
    wm = jnp.pad(wm, ((0, K - 27 * C), (0, Cp - out_ch))).astype(jnp.bfloat16)

    vmem_limit = _vmem_budget_bytes()
    y_pre, stats = pl.pallas_call(
        _conv_stats_kernel,
        out_shape=(
            jax.ShapeDtypeStruct((N, R_pad, Cp), jnp.bfloat16),
            jax.ShapeDtypeStruct((N, P, 2, Cp), jnp.float32),
        ),
        grid=(N, P, T),
        in_specs=[
            pl.BlockSpec((None, TR, K), lambda n, p, t: (n, p * T + t, 0)),
            pl.BlockSpec((K, Cp), lambda n, p, t: (0, 0)),
        ],
        out_specs=[
            pl.BlockSpec((None, TR, Cp), lambda n, p, t: (n, p * T + t, 0)),
            pl.BlockSpec((None, None, 2, Cp), lambda n, p, t: (n, p, 0, 0)),
        ],
        compiler_params=pltpu.CompilerParams(
            dimension_semantics=("parallel", "parallel", "arbitrary"),
            vmem_limit_bytes=vmem_limit,
        ),
    )(a, wm)

    s = jnp.sum(stats, axis=1)                       # (N, 2, Cp): reduce parallel shards
    inv_count = 1.0 / float(R)
    mean = s[:, 0, :] * inv_count
    var = jnp.maximum(s[:, 1, :] * inv_count - mean * mean, 0.0)
    inv = lax.rsqrt(var + EPS)
    meta = (N, D, H, W, R, R_pad, TR, NT, Cp)
    return y_pre, mean, inv, meta


def _stage1_to_stage2_input(y_pre, mean, inv, meta, out_ch):
    """Stage-1 InstanceNorm + ReLU + spatial re-pad at real channel width; XLA fuses this
    into the stage-2 operand packing (no standalone norm kernel, no 128-wide pad)."""
    N, D, H, W, R, _, _, _, _ = meta
    y = y_pre[:, :R, :out_ch].astype(jnp.float32)
    y = jnp.maximum((y - mean[:, None, :out_ch]) * inv[:, None, :out_ch], 0.0)
    y = y.astype(jnp.bfloat16).reshape(N, D, H, W, out_ch)
    return jnp.pad(y, ((0, 0), (1, 1), (1, 1), (1, 1), (0, 0)))


def _norm_relu_finalize(y_pre, mean, inv, meta):
    N, D, H, W, R, R_pad, TR, NT, Cp = meta
    inv_b = inv[:, None, :]                       # (N, 1, Cp) f32
    shift_b = (mean * inv)[:, None, :]            # (N, 1, Cp) f32
    return pl.pallas_call(
        _norm_relu_kernel,
        out_shape=jax.ShapeDtypeStruct((N, R_pad, Cp), jnp.bfloat16),
        grid=(N, NT),
        in_specs=[
            pl.BlockSpec((None, TR, Cp), lambda n, t: (n, t, 0)),
            pl.BlockSpec((None, 1, Cp), lambda n, t: (n, 0, 0)),
            pl.BlockSpec((None, 1, Cp), lambda n, t: (n, 0, 0)),
        ],
        out_specs=pl.BlockSpec((None, TR, Cp), lambda n, t: (n, t, 0)),
        compiler_params=pltpu.CompilerParams(
            dimension_semantics=("parallel", "parallel"),
            vmem_limit_bytes=_vmem_budget_bytes(),
        ),
    )(y_pre, inv_b, shift_b)


# ----------------------------------------------------------------------------
# Trilinear upsample (align_corners=False) with conv1's zero padding folded in.
# ----------------------------------------------------------------------------
def _linear_interp_matrix(in_size, out_size):
    i = jnp.arange(out_size, dtype=jnp.float32)
    scale = in_size / out_size
    src = jnp.maximum((i + 0.5) * scale - 0.5, 0.0)   # PyTorch clamps negative src to 0
    i0 = jnp.minimum(jnp.floor(src).astype(jnp.int32), in_size - 1)
    i1 = jnp.minimum(i0 + 1, in_size - 1)
    w1 = src - i0.astype(jnp.float32)
    w0 = 1.0 - w1
    rows = jnp.arange(out_size)
    M = jnp.zeros((out_size, in_size), jnp.float32)
    M = M.at[rows, i0].add(w0)
    M = M.at[rows, i1].add(w1)
    return M


def _trilinear_interp_padded(x_ndhwc, out_sizes):
    Do, Ho, Wo = out_sizes
    Md = jnp.pad(_linear_interp_matrix(x_ndhwc.shape[1], Do), ((1, 1), (0, 0)))
    Mh = jnp.pad(_linear_interp_matrix(x_ndhwc.shape[2], Ho), ((1, 1), (0, 0)))
    Mw = jnp.pad(_linear_interp_matrix(x_ndhwc.shape[3], Wo), ((1, 1), (0, 0)))
    x = x_ndhwc.astype(jnp.bfloat16)
    x = jnp.einsum('pd,ndhwc->nphwc', Md, x,
                   preferred_element_type=jnp.float32).astype(jnp.bfloat16)
    x = jnp.einsum('qh,ndhwc->ndqwc', Mh, x,
                   preferred_element_type=jnp.float32).astype(jnp.bfloat16)
    x = jnp.einsum('rw,ndhwc->ndhrc', Mw, x,
                   preferred_element_type=jnp.float32).astype(jnp.bfloat16)
    return x   # (N, Do+2, Ho+2, Wo+2, C) with a zero spatial border


# ----------------------------------------------------------------------------
# Full module forward.
# ----------------------------------------------------------------------------
def up_conv3d_block_forward(x_ncdhw, params, scale_tuple, target_size=None):
    x = jnp.transpose(x_ncdhw, (0, 2, 3, 4, 1))        # NCDHW -> NDHWC
    N, D, H, W, _ = x.shape
    if target_size is not None:
        Do, Ho, Wo = (int(s) for s in target_size)
    else:
        Do, Ho, Wo = (int(math.floor(sz * s)) for sz, s in zip((D, H, W), scale_tuple))
    out_ch = int(params['w1'].shape[0])

    xp = _trilinear_interp_padded(x, (Do, Ho, Wo))

    # NOTE: conv biases are intentionally not applied — InstanceNorm3d(affine=False)
    # subtracts the per-(n, c) mean, which cancels any per-channel constant exactly.
    y1_pre, mean1, inv1, meta1 = _conv_in_stage(xp, params['w1'])
    x2 = _stage1_to_stage2_input(y1_pre, mean1, inv1, meta1, out_ch)
    y2_pre, mean2, inv2, meta2 = _conv_in_stage(x2, params['w2'])
    y2 = _norm_relu_finalize(y2_pre, mean2, inv2, meta2)

    R = Do * Ho * Wo
    out = y2[:, :R, :out_ch].reshape(N, Do, Ho, Wo, out_ch)
    # Transpose in bf16, cast to f32 last (fused by XLA); public contract stays NCDHW f32.
    out = jnp.transpose(out, (0, 4, 1, 2, 3)).astype(jnp.float32)
    return out


# ----------------------------------------------------------------------------
# Deterministic parameter init (PyTorch Conv3d shapes; uniform(+-1/sqrt(fan_in))).
# ----------------------------------------------------------------------------
def init_params(key, in_ch, out_ch):
    k1, k2, k3, k4 = jax.random.split(key, 4)
    b1_ = 1.0 / math.sqrt(in_ch * 27)
    b2_ = 1.0 / math.sqrt(out_ch * 27)
    return {
        'w1': jax.random.uniform(k1, (out_ch, in_ch, 3, 3, 3), jnp.float32, -b1_, b1_),
        'b1': jax.random.uniform(k2, (out_ch,), jnp.float32, -b1_, b1_),  # cancelled by IN
        'w2': jax.random.uniform(k3, (out_ch, out_ch, 3, 3, 3), jnp.float32, -b2_, b2_),
        'b2': jax.random.uniform(k4, (out_ch,), jnp.float32, -b2_, b2_),  # cancelled by IN
    }


if __name__ == "__main__":
    key = jax.random.PRNGKey(0)
    kx, kp = jax.random.split(key)

    N, in_ch, out_ch = 2, 4, 8
    D = H = W = 4
    scale_tuple = (2, 2, 2)

    x = jax.random.normal(kx, (N, in_ch, D, H, W), jnp.float32)   # NCDHW like PyTorch
    params = init_params(kp, in_ch, out_ch)

    fwd = jax.jit(lambda x, p: up_conv3d_block_forward(x, p, scale_tuple))
    out = fwd(x, params)
    jax.block_until_ready(out)

    assert out.shape == (N, out_ch, 2 * D, 2 * H, 2 * W), out.shape
    assert bool(jnp.all(jnp.isfinite(out)))
    assert bool(jnp.all(out >= 0.0))  # final ReLU
    print("KERNEL_OK")
</pallas_src>

<mosaic_0001>
module attributes {stable_mosaic.version = 11 : i64} {
  func.func @_conv_stats_kernel(%arg0: i32, %arg1: i32, %arg2: i32, %arg3: memref<1x512x128xbf16, #tpu.memory_space<vmem>>, %arg4: memref<128x128xbf16, #tpu.memory_space<vmem>>, %arg5: memref<1x512x128xbf16, #tpu.memory_space<vmem>>, %arg6: memref<1x1x2x128xf32, #tpu.memory_space<vmem>>) attributes {dimension_semantics = [#tpu.dimension_semantics<parallel>, #tpu.dimension_semantics<parallel>, #tpu.dimension_semantics<arbitrary>], iteration_bounds = array<i64: 2, 1, 1>, scalar_prefetch = 0 : i64, scratch_operands = 0 : i64, tpu.core_type = #tpu.core_type<tc>, window_params = [{transform_indices = @transform_0, window_bounds = array<i64: 1, 512, 128>}, {pipeline_mode = #tpu.pipeline_mode<synchronous>, transform_indices = @transform_1, window_bounds = array<i64: 128, 128>}, {transform_indices = @transform_2, window_bounds = array<i64: 1, 512, 128>}, {transform_indices = @transform_3, window_bounds = array<i64: 1, 1, 2, 128>}]} {
    %c0 = arith.constant 0 : index
    %c0_0 = arith.constant 0 : index
    %c0_1 = arith.constant 0 : index
    %0 = vector.load %arg3[%c0, %c0_0, %c0_1] : memref<1x512x128xbf16, #tpu.memory_space<vmem>>, vector<1x512x128xbf16>
    %1 = vector.shape_cast %0 : vector<1x512x128xbf16> to vector<512x128xbf16>
    %c0_2 = arith.constant 0 : index
    %c0_3 = arith.constant 0 : index
    %2 = vector.load %arg4[%c0_2, %c0_3] : memref<128x128xbf16, #tpu.memory_space<vmem>>, vector<128x128xbf16>
    %cst = arith.constant dense<0.000000e+00> : vector<512x128xf32>
    %3 = tpu.matmul %1, %2, %cst {dimension_numbers = #tpu.dot_dimension_numbers<[1], [0], [0], [1], [0, 0, 1, 1], [], []>} : vector<512x128xbf16>, vector<128x128xbf16>, vector<512x128xf32> -> vector<512x128xf32>
    %4 = arith.truncf %3 : vector<512x128xf32> to vector<512x128xbf16>
    %c0_4 = arith.constant 0 : index
    %c0_5 = arith.constant 0 : index
    %c0_6 = arith.constant 0 : index
    %5 = vector.load %arg5[%c0_4, %c0_5, %c0_6] : memref<1x512x128xbf16, #tpu.memory_space<vmem>>, vector<1x512x128xbf16>
    %6 = vector.shape_cast %5 : vector<1x512x128xbf16> to vector<512x128xbf16>
    %7 = vector.shape_cast %4 : vector<512x128xbf16> to vector<1x512x128xbf16>
    tpu.vector_store %arg5[%c0_4, %c0_5, %c0_6], %7 {strides = array<i32>} : memref<1x512x128xbf16, #tpu.memory_space<vmem>>, vector<1x512x128xbf16>,
    %cst_7 = arith.constant dense<0.000000e+00> : vector<128xf32>
    %8 = vector.multi_reduction <add>, %3, %cst_7 [0] : vector<512x128xf32> to vector<128xf32>
    %9 = vector.shape_cast %8 : vector<128xf32> to vector<1x128xf32>
    %10 = arith.mulf %3, %3 : vector<512x128xf32>
    %cst_8 = arith.constant dense<0.000000e+00> : vector<128xf32>
    %11 = vector.multi_reduction <add>, %10, %cst_8 [0] : vector<512x128xf32> to vector<128xf32>
    %12 = vector.shape_cast %11 : vector<128xf32> to vector<1x128xf32>
    %13 = tpu.concatenate %9, %12 in 0 : vector<1x128xf32>, vector<1x128xf32> -> vector<2x128xf32>
    %c0_i32 = arith.constant 0 : i32
    %14 = arith.cmpi eq, %arg2, %c0_i32 : i32
    %15 = arith.extui %14 : i1 to i32
    %c0_i32_9 = arith.constant 0 : i32
    %16 = arith.cmpi ne, %15, %c0_i32_9 : i32
    scf.if %16 {
      %c0_12 = arith.constant 0 : index
      %c0_13 = arith.constant 0 : index
      %c0_14 = arith.constant 0 : index
      %c0_15 = arith.constant 0 : index
      %20 = vector.load %arg6[%c0_12, %c0_13, %c0_14, %c0_15] : memref<1x1x2x128xf32, #tpu.memory_space<vmem>>, vector<1x1x2x128xf32>
      %21 = vector.shape_cast %20 : vector<1x1x2x128xf32> to vector<2x128xf32>
      %22 = vector.shape_cast %13 : vector<2x128xf32> to vector<1x1x2x128xf32>
      tpu.vector_store %arg6[%c0_12, %c0_13, %c0_14, %c0_15], %22 {strides = array<i32>} : memref<1x1x2x128xf32, #tpu.memory_space<vmem>>, vector<1x1x2x128xf32>,
    } else {
    }
    %c0_i32_10 = arith.constant 0 : i32
    %17 = arith.cmpi sgt, %arg2, %c0_i32_10 : i32
    %18 = arith.extui %17 : i1 to i32
    %c0_i32_11 = arith.constant 0 : i32
    %19 = arith.cmpi ne, %18, %c0_i32_11 : i32
    scf.if %19 {
      %c0_12 = arith.constant 0 : index
      %c0_13 = arith.constant 0 : index
      %c0_14 = arith.constant 0 : index
      %c0_15 = arith.constant 0 : index
      %20 = vector.load %arg6[%c0_12, %c0_13, %c0_14, %c0_15] : memref<1x1x2x128xf32, #tpu.memory_space<vmem>>, vector<1x1x2x128xf32>
      %21 = vector.shape_cast %20 : vector<1x1x2x128xf32> to vector<2x128xf32>
      %22 = arith.addf %21, %13 : vector<2x128xf32>
      %c0_16 = arith.constant 0 : index
      %c0_17 = arith.constant 0 : index
      %c0_18 = arith.constant 0 : index
      %c0_19 = arith.constant 0 : index
      %23 = vector.load %arg6[%c0_16, %c0_17, %c0_18, %c0_19] : memref<1x1x2x128xf32, #tpu.memory_space<vmem>>, vector<1x1x2x128xf32>
      %24 = vector.shape_cast %23 : vector<1x1x2x128xf32> to vector<2x128xf32>
      %25 = vector.shape_cast %22 : vector<2x128xf32> to vector<1x1x2x128xf32>
      tpu.vector_store %arg6[%c0_16, %c0_17, %c0_18, %c0_19], %25 {strides = array<i32>} : memref<1x1x2x128xf32, #tpu.memory_space<vmem>>, vector<1x1x2x128xf32>,
    } else {
    }
    return
  }
  func.func @transform_0(%arg0: i32, %arg1: i32, %arg2: i32) -> (i32, i32, i32) {
    %c1_i32 = arith.constant 1 : i32
    %0 = arith.muli %arg1, %c1_i32 : i32
    %1 = arith.addi %0, %arg2 : i32
    %c0_i32 = arith.constant 0 : i32
    %c0_i32_0 = arith.constant 0 : i32
    return %arg0, %1, %c0_i32 : i32, i32, i32
  }
  func.func @transform_1(%arg0: i32, %arg1: i32, %arg2: i32) -> (i32, i32) {
    %c0_i32 = arith.constant 0 : i32
    %c0_i32_0 = arith.constant 0 : i32
    %c0_i32_1 = arith.constant 0 : i32
    return %c0_i32, %c0_i32_0 : i32, i32
  }
  func.func @transform_2(%arg0: i32, %arg1: i32, %arg2: i32) -> (i32, i32, i32) {
    %c1_i32 = arith.constant 1 : i32
    %0 = arith.muli %arg1, %c1_i32 : i32
    %1 = arith.addi %0, %arg2 : i32
    %c0_i32 = arith.constant 0 : i32
    %c0_i32_0 = arith.constant 0 : i32
    return %arg0, %1, %c0_i32 : i32, i32, i32
  }
  func.func @transform_3(%arg0: i32, %arg1: i32, %arg2: i32) -> (i32, i32, i32, i32) {
    %c0_i32 = arith.constant 0 : i32
    %c0_i32_0 = arith.constant 0 : i32
    %c0_i32_1 = arith.constant 0 : i32
    return %arg0, %arg1, %c0_i32, %c0_i32_0 : i32, i32, i32, i32
  }
}

module attributes {stable_mosaic.version = 11 : i64} {
  func.func @_conv_stats_kernel(%arg0: i32, %arg1: i32, %arg2: i32, %arg3: memref<1x512x256xbf16, #tpu.memory_space<vmem>>, %arg4: memref<256x128xbf16, #tpu.memory_space<vmem>>, %arg5: memref<1x512x128xbf16, #tpu.memory_space<vmem>>, %arg6: memref<1x1x2x128xf32, #tpu.memory_space<vmem>>) attributes {dimension_semantics = [#tpu.dimension_semantics<parallel>, #tpu.dimension_semantics<parallel>, #tpu.dimension_semantics<arbitrary>], iteration_bounds = array<i64: 2, 1, 1>, scalar_prefetch = 0 : i64, scratch_operands = 0 : i64, tpu.core_type = #tpu.core_type<tc>, window_params = [{transform_indices = @transform_0, window_bounds = array<i64: 1, 512, 256>}, {pipeline_mode = #tpu.pipeline_mode<synchronous>, transform_indices = @transform_1, window_bounds = array<i64: 256, 128>}, {transform_indices = @transform_2, window_bounds = array<i64: 1, 512, 128>}, {transform_indices = @transform_3, window_bounds = array<i64: 1, 1, 2, 128>}]} {
    %c0 = arith.constant 0 : index
    %c0_0 = arith.constant 0 : index
    %c0_1 = arith.constant 0 : index
    %0 = vector.load %arg3[%c0, %c0_0, %c0_1] : memref<1x512x256xbf16, #tpu.memory_space<vmem>>, vector<1x512x256xbf16>
    %1 = vector.shape_cast %0 : vector<1x512x256xbf16> to vector<512x256xbf16>
    %c0_2 = arith.constant 0 : index
    %c0_3 = arith.constant 0 : index
    %2 = vector.load %arg4[%c0_2, %c0_3] : memref<256x128xbf16, #tpu.memory_space<vmem>>, vector<256x128xbf16>
    %cst = arith.constant dense<0.000000e+00> : vector<512x128xf32>
    %3 = tpu.matmul %1, %2, %cst {dimension_numbers = #tpu.dot_dimension_numbers<[1], [0], [0], [1], [0, 0, 1, 1], [], []>} : vector<512x256xbf16>, vector<256x128xbf16>, vector<512x128xf32> -> vector<512x128xf32>
    %4 = arith.truncf %3 : vector<512x128xf32> to vector<512x128xbf16>
    %c0_4 = arith.constant 0 : index
    %c0_5 = arith.constant 0 : index
    %c0_6 = arith.constant 0 : index
    %5 = vector.load %arg5[%c0_4, %c0_5, %c0_6] : memref<1x512x128xbf16, #tpu.memory_space<vmem>>, vector<1x512x128xbf16>
    %6 = vector.shape_cast %5 : vector<1x512x128xbf16> to vector<512x128xbf16>
    %7 = vector.shape_cast %4 : vector<512x128xbf16> to vector<1x512x128xbf16>
    tpu.vector_store %arg5[%c0_4, %c0_5, %c0_6], %7 {strides = array<i32>} : memref<1x512x128xbf16, #tpu.memory_space<vmem>>, vector<1x512x128xbf16>,
    %cst_7 = arith.constant dense<0.000000e+00> : vector<128xf32>
    %8 = vector.multi_reduction <add>, %3, %cst_7 [0] : vector<512x128xf32> to vector<128xf32>
    %9 = vector.shape_cast %8 : vector<128xf32> to vector<1x128xf32>
    %10 = arith.mulf %3, %3 : vector<512x128xf32>
    %cst_8 = arith.constant dense<0.000000e+00> : vector<128xf32>
    %11 = vector.multi_reduction <add>, %10, %cst_8 [0] : vector<512x128xf32> to vector<128xf32>
    %12 = vector.shape_cast %11 : vector<128xf32> to vector<1x128xf32>
    %13 = tpu.concatenate %9, %12 in 0 : vector<1x128xf32>, vector<1x128xf32> -> vector<2x128xf32>
    %c0_i32 = arith.constant 0 : i32
    %14 = arith.cmpi eq, %arg2, %c0_i32 : i32
    %15 = arith.extui %14 : i1 to i32
    %c0_i32_9 = arith.constant 0 : i32
    %16 = arith.cmpi ne, %15, %c0_i32_9 : i32
    scf.if %16 {
      %c0_12 = arith.constant 0 : index
      %c0_13 = arith.constant 0 : index
      %c0_14 = arith.constant 0 : index
      %c0_15 = arith.constant 0 : index
      %20 = vector.load %arg6[%c0_12, %c0_13, %c0_14, %c0_15] : memref<1x1x2x128xf32, #tpu.memory_space<vmem>>, vector<1x1x2x128xf32>
      %21 = vector.shape_cast %20 : vector<1x1x2x128xf32> to vector<2x128xf32>
      %22 = vector.shape_cast %13 : vector<2x128xf32> to vector<1x1x2x128xf32>
      tpu.vector_store %arg6[%c0_12, %c0_13, %c0_14, %c0_15], %22 {strides = array<i32>} : memref<1x1x2x128xf32, #tpu.memory_space<vmem>>, vector<1x1x2x128xf32>,
    } else {
    }
    %c0_i32_10 = arith.constant 0 : i32
    %17 = arith.cmpi sgt, %arg2, %c0_i32_10 : i32
    %18 = arith.extui %17 : i1 to i32
    %c0_i32_11 = arith.constant 0 : i32
    %19 = arith.cmpi ne, %18, %c0_i32_11 : i32
    scf.if %19 {
      %c0_12 = arith.constant 0 : index
      %c0_13 = arith.constant 0 : index
      %c0_14 = arith.constant 0 : index
      %c0_15 = arith.constant 0 : index
      %20 = vector.load %arg6[%c0_12, %c0_13, %c0_14, %c0_15] : memref<1x1x2x128xf32, #tpu.memory_space<vmem>>, vector<1x1x2x128xf32>
      %21 = vector.shape_cast %20 : vector<1x1x2x128xf32> to vector<2x128xf32>
      %22 = arith.addf %21, %13 : vector<2x128xf32>
      %c0_16 = arith.constant 0 : index
      %c0_17 = arith.constant 0 : index
      %c0_18 = arith.constant 0 : index
      %c0_19 = arith.constant 0 : index
      %23 = vector.load %arg6[%c0_16, %c0_17, %c0_18, %c0_19] : memref<1x1x2x128xf32, #tpu.memory_space<vmem>>, vector<1x1x2x128xf32>
      %24 = vector.shape_cast %23 : vector<1x1x2x128xf32> to vector<2x128xf32>
      %25 = vector.shape_cast %22 : vector<2x128xf32> to vector<1x1x2x128xf32>
      tpu.vector_store %arg6[%c0_16, %c0_17, %c0_18, %c0_19], %25 {strides = array<i32>} : memref<1x1x2x128xf32, #tpu.memory_space<vmem>>, vector<1x1x2x128xf32>,
    } else {
    }
    return
  }
  func.func @transform_0(%arg0: i32, %arg1: i32, %arg2: i32) -> (i32, i32, i32) {
    %c1_i32 = arith.constant 1 : i32
    %0 = arith.muli %arg1, %c1_i32 : i32
    %1 = arith.addi %0, %arg2 : i32
    %c0_i32 = arith.constant 0 : i32
    %c0_i32_0 = arith.constant 0 : i32
    return %arg0, %1, %c0_i32 : i32, i32, i32
  }
  func.func @transform_1(%arg0: i32, %arg1: i32, %arg2: i32) -> (i32, i32) {
    %c0_i32 = arith.constant 0 : i32
    %c0_i32_0 = arith.constant 0 : i32
    %c0_i32_1 = arith.constant 0 : i32
    return %c0_i32, %c0_i32_0 : i32, i32
  }
  func.func @transform_2(%arg0: i32, %arg1: i32, %arg2: i32) -> (i32, i32, i32) {
    %c1_i32 = arith.constant 1 : i32
    %0 = arith.muli %arg1, %c1_i32 : i32
    %1 = arith.addi %0, %arg2 : i32
    %c0_i32 = arith.constant 0 : i32
    %c0_i32_0 = arith.constant 0 : i32
    return %arg0, %1, %c0_i32 : i32, i32, i32
  }
  func.func @transform_3(%arg0: i32, %arg1: i32, %arg2: i32) -> (i32, i32, i32, i32) {
    %c0_i32 = arith.constant 0 : i32
    %c0_i32_0 = arith.constant 0 : i32
    %c0_i32_1 = arith.constant 0 : i32
    return %arg0, %arg1, %c0_i32, %c0_i32_0 : i32, i32, i32, i32
  }
}

module attributes {stable_mosaic.version = 11 : i64} {
  func.func @_norm_relu_kernel(%arg0: i32, %arg1: i32, %arg2: memref<1x512x128xbf16, #tpu.memory_space<vmem>>, %arg3: memref<1x1x128xf32, #tpu.memory_space<vmem>>, %arg4: memref<1x1x128xf32, #tpu.memory_space<vmem>>, %arg5: memref<1x512x128xbf16, #tpu.memory_space<vmem>>) attributes {dimension_semantics = [#tpu.dimension_semantics<parallel>, #tpu.dimension_semantics<parallel>], iteration_bounds = array<i64: 2, 1>, scalar_prefetch = 0 : i64, scratch_operands = 0 : i64, tpu.core_type = #tpu.core_type<tc>, window_params = [{transform_indices = @transform_0, window_bounds = array<i64: 1, 512, 128>}, {transform_indices = @transform_1, window_bounds = array<i64: 1, 1, 128>}, {transform_indices = @transform_2, window_bounds = array<i64: 1, 1, 128>}, {transform_indices = @transform_3, window_bounds = array<i64: 1, 512, 128>}]} {
    %c0 = arith.constant 0 : index
    %c0_0 = arith.constant 0 : index
    %c0_1 = arith.constant 0 : index
    %0 = vector.load %arg2[%c0, %c0_0, %c0_1] : memref<1x512x128xbf16, #tpu.memory_space<vmem>>, vector<1x512x128xbf16>
    %1 = vector.shape_cast %0 : vector<1x512x128xbf16> to vector<512x128xbf16>
    %2 = arith.extf %1 : vector<512x128xbf16> to vector<512x128xf32>
    %c0_2 = arith.constant 0 : index
    %c0_3 = arith.constant 0 : index
    %c0_4 = arith.constant 0 : index
    %3 = vector.load %arg3[%c0_2, %c0_3, %c0_4] : memref<1x1x128xf32, #tpu.memory_space<vmem>>, vector<1x1x128xf32>
    %4 = vector.shape_cast %3 : vector<1x1x128xf32> to vector<1x128xf32>
    %5 = vector.broadcast %4 : vector<1x128xf32> to vector<512x128xf32>
    %6 = arith.mulf %2, %5 : vector<512x128xf32>
    %c0_5 = arith.constant 0 : index
    %c0_6 = arith.constant 0 : index
    %c0_7 = arith.constant 0 : index
    %7 = vector.load %arg4[%c0_5, %c0_6, %c0_7] : memref<1x1x128xf32, #tpu.memory_space<vmem>>, vector<1x1x128xf32>
    %8 = vector.shape_cast %7 : vector<1x1x128xf32> to vector<1x128xf32>
    %9 = vector.broadcast %8 : vector<1x128xf32> to vector<512x128xf32>
    %10 = arith.subf %6, %9 : vector<512x128xf32>
    %cst = arith.constant 0.000000e+00 : f32
    %11 = vector.broadcast %cst : f32 to vector<512x128xf32>
    %12 = arith.maximumf %10, %11 : vector<512x128xf32>
    %13 = arith.truncf %12 : vector<512x128xf32> to vector<512x128xbf16>
    %c0_8 = arith.constant 0 : index
    %c0_9 = arith.constant 0 : index
    %c0_10 = arith.constant 0 : index
    %14 = vector.load %arg5[%c0_8, %c0_9, %c0_10] : memref<1x512x128xbf16, #tpu.memory_space<vmem>>, vector<1x512x128xbf16>
    %15 = vector.shape_cast %14 : vector<1x512x128xbf16> to vector<512x128xbf16>
    %16 = vector.shape_cast %13 : vector<512x128xbf16> to vector<1x512x128xbf16>
    tpu.vector_store %arg5[%c0_8, %c0_9, %c0_10], %16 {strides = array<i32>} : memref<1x512x128xbf16, #tpu.memory_space<vmem>>, vector<1x512x128xbf16>,
    return
  }
  func.func @transform_0(%arg0: i32, %arg1: i32) -> (i32, i32, i32) {
    %c0_i32 = arith.constant 0 : i32
    %c0_i32_0 = arith.constant 0 : i32
    return %arg0, %arg1, %c0_i32 : i32, i32, i32
  }
  func.func @transform_1(%arg0: i32, %arg1: i32) -> (i32, i32, i32) {
    %c0_i32 = arith.constant 0 : i32
    %c0_i32_0 = arith.constant 0 : i32
    %c0_i32_1 = arith.constant 0 : i32
    return %arg0, %c0_i32, %c0_i32_0 : i32, i32, i32
  }
  func.func @transform_2(%arg0: i32, %arg1: i32) -> (i32, i32, i32) {
    %c0_i32 = arith.constant 0 : i32
    %c0_i32_0 = arith.constant 0 : i32
    %c0_i32_1 = arith.constant 0 : i32
    return %arg0, %c0_i32, %c0_i32_0 : i32, i32, i32
  }
  func.func @transform_3(%arg0: i32, %arg1: i32) -> (i32, i32, i32) {
    %c0_i32 = arith.constant 0 : i32
    %c0_i32_0 = arith.constant 0 : i32
    return %arg0, %arg1, %c0_i32 : i32, i32, i32
  }
}

</mosaic_0001>

<bundles_post_ra>
// kernel: _lambda_.3
= control target key start
LH: loop header
LB: loop body
LE: loop exit
PB: predicated region body
PF: predicated region fallthrough
CT: control target
= control target key end

     0   :  { %s2145_s12 = smov 0   ;;  %s2147_s13 = smov 0   ;;  %s2473_s0 = inlined_call_operand.vmem [shape: bf16[2,512,128], index: 0, kind: input, shape index: {}]   ;;  %s2474_s1 = inlined_call_operand.vmem [shape: bf16[128,128], index: 1, kind: input, shape index: {}]   ;;  %s2475_s2 = inlined_call_operand.vmem [shape: bf16[2,512,128], index: 2, kind: output, shape index: {0}]   ;;  %s2476_s3 = inlined_call_operand.vmem [shape: f32[2,1,2,128], index: 3, kind: output, shape index: {1}]  }
   0x1   :  { %s2149_s14 = smov 0  }
   0x2 LB: > { %s33_s15 = sadd.s32 1, %s2119_s13  ;;  %p1532_p0 = scmp.ge.s32.totalorder %s2123_s14, 1  ;;  %s2123_s14 = sphi %s2149_s14, %s14_s14   ;;  %s2119_s13 = sphi %s2147_s13, %s2478_s13   ;;  %s2115_s12 = sphi %s2145_s12, %s2477_s12  }
   0x3   : > { %p35_p1 = scmp.ge.s32.totalorder %s33_s15, 2  ;;  %p176_p2 = scmp.lt.s32.totalorder %s2123_s14, 3 }
   0x5   : > { %s2480_s15 = smov (%p35_p1, %s33_s15), 0  ;;  %p177_p3 = pnand %p1532_p0, %p176_p2 }
   0x6   : > { %v2061_v0 = vld [vmem:[%s2474_s1] sm:$0xff] (!%p177_p3)   ;;  %p219_p4 = scmp.lt.s32.totalorder (!%p177_p3), %s2115_s12, 1  ;;  %v2062_v1 = vld [vmem:[%s2474_s1 + $0x8] sm:$0xff] (!%p177_p3)   ;;  %v2063_v2 = vld [vmem:[%s2474_s1 + $0x10] sm:$0xff] (!%p177_p3)   ;;  %vm1380_vm0 = vcmask (!%p177_p3), 1040384  }
   0x7   : > { %180 = sbr.rel (%p177_p3) target bundleno = 396 (0x18c), region = 28  ;;  %1941 = vmatprep.subr.bf16.mxu0 (!%p177_p3), %v2061_v0  ;;  %2021 = vmatprep.subr.bf16.mxu1 (!%p177_p3), %v2061_v0  ;;  %v2064_v3 = vld [vmem:[%s2474_s1 + $0x18] sm:$0xff] (!%p177_p3)   ;;  %v2065_v5 = vld [vmem:[%s2474_s1 + $0x20] sm:$0xff] (!%p177_p3)   ;;  %v2066_v6 = vld [vmem:[%s2474_s1 + $0x28] sm:$0xff] (!%p177_p3)  }
   0x8   : > { %1942 = vmatpush3.bf16.msra.mxu0 (!%p177_p3), %v2061_v0  ;;  %2029 = vmatpush3.bf16.msra.mxu1 (!%p177_p3), %v2061_v0  ;;  %v2067_v7 = vld [vmem:[%s2474_s1 + $0x30] sm:$0xff] (!%p177_p3)   ;;  %v2068_v8 = vld [vmem:[%s2474_s1 + $0x38] sm:$0xff] (!%p177_p3)  }
   0x9   : > { %1943 = vmatprep.subr.bf16.mxu0 (!%p177_p3), %v2062_v1  ;;  %2022 = vmatprep.subr.bf16.mxu1 (!%p177_p3), %v2062_v1 }
   0xc   : > { %1944 = vmatpush3.bf16.msra.mxu0 (!%p177_p3), %v2062_v1  ;;  %2030 = vmatpush3.bf16.msra.mxu1 (!%p177_p3), %v2062_v1 }
   0xd   : > { %1945 = vmatprep.subr.bf16.mxu0 (!%p177_p3), %v2063_v2  ;;  %2023 = vmatprep.subr.bf16.mxu1 (!%p177_p3), %v2063_v2 }
   0xe   : > { %s2482_s12 = smov (!%p219_p4, %s2115_s12), 1 }
   0xf   : > { %s1644_s22 = sshll.u32 %s2482_s12, 8  ;;  %s1537_s16 = sshll.u32 %s2482_s12, 1 }
  0x10   : > { %s2180_s25 = scalar_lea.vmem %s2473_s0, %s1644_s22  ;;  %1946 = vmatpush3.bf16.msra.mxu0 %v2063_v2  ;;  %2031 = vmatpush3.bf16.msra.mxu1 %v2063_v2  ;;  %s2238_s11 = scalar_lea.vmem %s2475_s2, %s1644_s22 }
  0x11   : > { %v2069_v4 = vld [vmem:[%s2180_s25] sm:$0xff]   ;;  %1947 = vmatprep.subr.bf16.mxu0 %v2064_v3  ;;  %2024 = vmatprep.subr.bf16.mxu1 %v2064_v3  ;;  %v2070_v10 = vld [vmem:[%s2180_s25 + $0x8] sm:$0xff]   ;;  %v2071_v11 = vld [vmem:[%s2180_s25 + $0x10] sm:$0xff]   ;;  %s247_s19 = scalar_lea.vmem %s2476_s3, %s1537_s16 }
  0x12   : > { %1957 = vmatprep.mubr.bf16.mxu0 %v2069_v4  ;;  %v2085_v9 = vld [vmem:[%s2180_s25 + $0x80] sm:$0xff]   ;;  %v2086_v12 = vld [vmem:[%s2180_s25 + $0x88] sm:$0xff]   ;;  %v2087_v13 = vld [vmem:[%s2180_s25 + $0x90] sm:$0xff]  }
  0x13   : > { %1989 = vmatprep.mubr.bf16.mxu1 %v2085_v9  ;;  %v2072_v14 = vld [vmem:[%s2180_s25 + $0x18] sm:$0xff]   ;;  %v2073_v15 = vld [vmem:[%s2180_s25 + $0x20] sm:$0xff]   ;;  %v2074_v18 = vld [vmem:[%s2180_s25 + $0x28] sm:$0xff]  }
  0x14   : > { %1948 = vmatpush3.bf16.msra.mxu0 %v2064_v3  ;;  %2032 = vmatpush3.bf16.msra.mxu1 %v2064_v3  ;;  %v2088_v16 = vld [vmem:[%s2180_s25 + $0x98] sm:$0xff]   ;;  %v2089_v17 = vld [vmem:[%s2180_s25 + $0xa0] sm:$0xff]   ;;  %v2090_v19 = vld [vmem:[%s2180_s25 + $0xa8] sm:$0xff]  }
  0x15   : > { %1949 = vmatprep.subr.bf16.mxu0 %v2065_v5  ;;  %2025 = vmatprep.subr.bf16.mxu1 %v2065_v5  ;;  %v2075_v20 = vld [vmem:[%s2180_s25 + $0x30] sm:$0xff]   ;;  %v2076_v22 = vld [vmem:[%s2180_s25 + $0x38] sm:$0xff]   ;;  %v2077_v24 = vld [vmem:[%s2180_s25 + $0x40] sm:$0xff]  }
  0x16   : > { %v2091_v21 = vld [vmem:[%s2180_s25 + $0xb0] sm:$0xff]   ;;  %v2092_v23 = vld [vmem:[%s2180_s25 + $0xb8] sm:$0xff]   ;;  %v2093_v25 = vld [vmem:[%s2180_s25 + $0xc0] sm:$0xff]  }
  0x17   : > { %v2078_v26 = vld [vmem:[%s2180_s25 + $0x48] sm:$0xff]   ;;  %v2079_v28 = vld [vmem:[%s2180_s25 + $0x50] sm:$0xff]   ;;  %v2080_v30 = vld [vmem:[%s2180_s25 + $0x58] sm:$0xff]  }
  0x18   : > { %1950 = vmatpush3.bf16.msra.mxu0 %v2065_v5  ;;  %2033 = vmatpush3.bf16.msra.mxu1 %v2065_v5  ;;  %v2094_v27 = vld [vmem:[%s2180_s25 + $0xc8] sm:$0xff]   ;;  %v2095_v29 = vld [vmem:[%s2180_s25 + $0xd0] sm:$0xff]   ;;  %v2096_v31 = vld [vmem:[%s2180_s25 + $0xd8] sm:$0xff]  }
  0x19   : > { %1951 = vmatprep.subr.bf16.mxu0 %v2066_v6  ;;  %2026 = vmatprep.subr.bf16.mxu1 %v2066_v6  ;;  %v2081_v32 = vld [vmem:[%s2180_s25 + $0x60] sm:$0xff]   ;;  %v2082_v34 = vld [vmem:[%s2180_s25 + $0x68] sm:$0xff]   ;;  %v2083_v36 = vld [vmem:[%s2180_s25 + $0x70] sm:$0xff]  }
  0x1a   : > { %v2097_v33 = vld [vmem:[%s2180_s25 + $0xe0] sm:$0xff]   ;;  %v2098_v35 = vld [vmem:[%s2180_s25 + $0xe8] sm:$0xff]   ;;  %v2099_v37 = vld [vmem:[%s2180_s25 + $0xf0] sm:$0xff]  }
  0x1b   : > { %v2084_v38 = vld [vmem:[%s2180_s25 + $0x78] sm:$0xff]  }
  0x1c   : > { %1952 = vmatpush3.bf16.msra.mxu0 %v2066_v6  ;;  %2034 = vmatpush3.bf16.msra.mxu1 %v2066_v6  ;;  %v2100_v39 = vld [vmem:[%s2180_s25 + $0xf8] sm:$0xff]  }
  0x1d   : > { %1953 = vmatprep.subr.bf16.mxu0 %v2067_v7  ;;  %2027 = vmatprep.subr.bf16.mxu1 %v2067_v7 }
  0x20   : > { %1954 = vmatpush3.bf16.msra.mxu0 %v2067_v7  ;;  %2035 = vmatpush3.bf16.msra.mxu1 %v2067_v7 }
  0x21   : > { %1955 = vmatprep.subr.bf16.mxu0 %v2068_v8  ;;  %2028 = vmatprep.subr.bf16.mxu1 %v2068_v8 }
  0x24   : > { %1956 = vmatpush3.bf16.msra.mxu0 %v2068_v8  ;;  %2036 = vmatpush3.bf16.msra.mxu1 %v2068_v8 }
  0x27   : > { %1958 = vmatmul.mubr.bf16.vlgmr.msra.gmra.mrb[0].mxu0 %v2070_v10  ;;  %1990 = vmatmul.mubr.bf16.vlgmr.msra.gmra.mrb[0].mxu1 %v2086_v12 }
  0x28   : > { %1961 = vmatprep.mubr.bf16.mxu0 %v2071_v11  ;;  %1993 = vmatprep.mubr.bf16.mxu1 %v2087_v13 }
  0x2f   : > { %1962 = vmatmul.mubr.bf16.gmra.mrb[4].mxu0 %v2072_v14  ;;  %1994 = vmatmul.mubr.bf16.gmra.mrb[4].mxu1 %v2088_v16 }
  0x30   : > { %1965 = vmatprep.mubr.bf16.mxu0 %v2073_v15  ;;  %1997 = vmatprep.mubr.bf16.mxu1 %v2089_v17 }
  0x37   : > { %1966 = vmatmul.mubr.bf16.gmra.mrb[8].mxu0 %v2074_v18  ;;  %1998 = vmatmul.mubr.bf16.gmra.mrb[8].mxu1 %v2090_v19 }
  0x38   : > { %1969 = vmatprep.mubr.bf16.mxu0 %v2075_v20  ;;  %2001 = vmatprep.mubr.bf16.mxu1 %v2091_v21 }
  0x3f   : > { %1970 = vmatmul.mubr.bf16.gmra.mrb[12].mxu0 %v2076_v22  ;;  %2002 = vmatmul.mubr.bf16.gmra.mrb[12].mxu1 %v2092_v23 }
  0x40   : > { %1973 = vmatprep.mubr.bf16.mxu0 %v2077_v24  ;;  %2005 = vmatprep.mubr.bf16.mxu1 %v2093_v25 }
  0x47   : > { %1974 = vmatmul.mubr.bf16.gmra.mrb[16].mxu0 %v2078_v26  ;;  %2006 = vmatmul.mubr.bf16.gmra.mrb[16].mxu1 %v2094_v27 }
  0x48   : > { %1977 = vmatprep.mubr.bf16.mxu0 %v2079_v28  ;;  %2009 = vmatprep.mubr.bf16.mxu1 %v2095_v29 }
  0x4f   : > { %1978 = vmatmul.mubr.bf16.gmra.mrb[20].mxu0 %v2080_v30  ;;  %2010 = vmatmul.mubr.bf16.gmra.mrb[20].mxu1 %v2096_v31 }
  0x50   : > { %1981 = vmatprep.mubr.bf16.mxu0 %v2081_v32  ;;  %2013 = vmatprep.mubr.bf16.mxu1 %v2097_v33 }
  0x57   : > { %1982 = vmatmul.mubr.bf16.gmra.mrb[24].mxu0 %v2082_v34  ;;  %2014 = vmatmul.mubr.bf16.gmra.mrb[24].mxu1 %v2098_v35 }
  0x58   : > { %1985 = vmatprep.mubr.bf16.mxu0 %v2083_v36  ;;  %2017 = vmatprep.mubr.bf16.mxu1 %v2099_v37 }
  0x5f   : > { %1986 = vmatmul.mubr.bf16.gmra.mrb[28].mxu0 %v2084_v38  ;;  %2018 = vmatmul.mubr.bf16.gmra.mrb[28].mxu1 %v2100_v39 }
  0xfa   : > { %v1959_v40 = vpop.f32.mrb[0].mxu0  ;;  %v2229_v41 = vpop.f32.mrb[0].mxu1 }
  0xfb   : > { %v603_v42 = vpop.f32.mrb[1].mxu0  ;;  %v2231_v43 = vpop.f32.mrb[1].mxu1  ;;  %v1249_v55 = vmul.f32 %v1959_v40, %v1959_v40 }
  0xfc   : > { %v1960_v44 = vpop.f32.mrb[2].mxu0  ;;  %v2240_v45 = vpop.f32.mrb[2].mxu1  ;;  %v1247_v46 = vmul.f32 %v603_v42, %v603_v42 }
  0xfd   : > { %v1718_v47 = vpack.c.bf16 %v1960_v44, %v1959_v40  ;;  %v606_v48 = vpop.f32.mrb[3].mxu0  ;;  %v1798_v49 = vpack.c.bf16 %v2240_v45, %v2229_v41  ;;  %v2244_v50 = vpop.f32.mrb[3].mxu1  ;;  %v1250_v58 = vmul.f32 %v1960_v44, %v1960_v44 }
  0xfe   : > { %v1713_v51 = vpack.c.bf16 %v606_v48, %v603_v42  ;;  %v1178_v52 = vadd.f32 %v606_v48, %v603_v42  ;;  %v1248_v53 = vmul.f32 %v606_v48, %v606_v48  ;;  %v1793_v54 = vpack.c.bf16 %v2244_v50, %v2231_v43 }
  0xff   : > { %1870 = vst [vmem:[%s2238_s11 + $0x8] sm:$0xff] %v1718_v47   ;;  %1886 = vst [vmem:[%s2238_s11 + $0x88] sm:$0xff] %v1798_v49  }
 0x100   : > { %1714 = vst [vmem:[%s2238_s11] sm:$0xff] %v1713_v51   ;;  %v1179_v56 = vadd.f32 %v1959_v40, %v1178_v52  ;;  %v1311_v57 = vadd.f32 %v1248_v53, %v1247_v46  ;;  %1885 = vst [vmem:[%s2238_s11 + $0x80] sm:$0xff] %v1793_v54  }
 0x102   : > { %v1312_v59 = vadd.f32 %v1311_v57, %v1249_v55  ;;  %v1963_v60 = vpop.f32.mrb[4].mxu0  ;;  %v1180_v61 = vadd.f32 %v1960_v44, %v1179_v56  ;;  %v2252_v62 = vpop.f32.mrb[4].mxu1 }
 0x103   : > { %v619_v63 = vpop.f32.mrb[5].mxu0  ;;  %v2254_v0 = vpop.f32.mrb[5].mxu1  ;;  %v1253_v15 = vmul.f32 %v1963_v60, %v1963_v60 }
 0x104   : > { %v1181_v1 = vadd.f32 %v1180_v61, %v619_v63  ;;  %v1251_v2 = vmul.f32 %v619_v63, %v619_v63  ;;  %v1313_v3 = vadd.f32 %v1312_v59, %v1250_v58  ;;  %v1964_v4 = vpop.f32.mrb[6].mxu0  ;;  %v2256_v5 = vpop.f32.mrb[6].mxu1 }
 0x105   : > { %v1728_v6 = vpack.c.bf16 %v1964_v4, %v1963_v60  ;;  %v622_v7 = vpop.f32.mrb[7].mxu0  ;;  %v1808_v8 = vpack.c.bf16 %v2256_v5, %v2252_v62  ;;  %v2260_v9 = vpop.f32.mrb[7].mxu1  ;;  %v1254_v18 = vmul.f32 %v1964_v4, %v1964_v4 }
 0x106   : > { %v1314_v10 = vadd.f32 %v1313_v3, %v1251_v2  ;;  %v1723_v11 = vpack.c.bf16 %v622_v7, %v619_v63  ;;  %v1182_v12 = vadd.f32 %v1181_v1, %v622_v7  ;;  %v1252_v13 = vmul.f32 %v622_v7, %v622_v7 }
 0x107   : > { %1872 = vst [vmem:[%s2238_s11 + $0x18] sm:$0xff] %v1728_v6   ;;  %1888 = vst [vmem:[%s2238_s11 + $0x98] sm:$0xff] %v1808_v8   ;;  %v1803_v14 = vpack.c.bf16 %v2260_v9, %v2254_v0 }
 0x108   : > { %1871 = vst [vmem:[%s2238_s11 + $0x10] sm:$0xff] %v1723_v11   ;;  %v1183_v16 = vadd.f32 %v1963_v60, %v1182_v12  ;;  %v1315_v17 = vadd.f32 %v1314_v10, %v1252_v13 }
 0x109   : > { %1887 = vst [vmem:[%s2238_s11 + $0x90] sm:$0xff] %v1803_v14  }
 0x10a   : > { %v1316_v19 = vadd.f32 %v1315_v17, %v1253_v15  ;;  %v1967_v20 = vpop.f32.mrb[8].mxu0  ;;  %v1184_v21 = vadd.f32 %v1964_v4, %v1183_v16  ;;  %v2268_v22 = vpop.f32.mrb[8].mxu1 }
 0x10b   : > { %v635_v23 = vpop.f32.mrb[9].mxu0  ;;  %v2270_v24 = vpop.f32.mrb[9].mxu1  ;;  %v1257_v39 = vmul.f32 %v1967_v20, %v1967_v20 }
 0x10c   : > { %v1185_v25 = vadd.f32 %v1184_v21, %v635_v23  ;;  %v1255_v26 = vmul.f32 %v635_v23, %v635_v23  ;;  %v1317_v27 = vadd.f32 %v1316_v19, %v1254_v18  ;;  %v1968_v28 = vpop.f32.mrb[10].mxu0  ;;  %v2272_v29 = vpop.f32.mrb[10].mxu1 }
 0x10d   : > { %v1738_v30 = vpack.c.bf16 %v1968_v28, %v1967_v20  ;;  %v638_v31 = vpop.f32.mrb[11].mxu0  ;;  %v1818_v32 = vpack.c.bf16 %v2272_v29, %v2268_v22  ;;  %v2276_v33 = vpop.f32.mrb[11].mxu1  ;;  %v1258_v44 = vmul.f32 %v1968_v28, %v1968_v28 }
 0x10e   : > { %v1318_v34 = vadd.f32 %v1317_v27, %v1255_v26  ;;  %v1733_v35 = vpack.c.bf16 %v638_v31, %v635_v23  ;;  %v1186_v36 = vadd.f32 %v1185_v25, %v638_v31  ;;  %v1256_v37 = vmul.f32 %v638_v31, %v638_v31 }
 0x10f   : > { %1874 = vst [vmem:[%s2238_s11 + $0x28] sm:$0xff] %v1738_v30   ;;  %1890 = vst [vmem:[%s2238_s11 + $0xa8] sm:$0xff] %v1818_v32   ;;  %v1813_v38 = vpack.c.bf16 %v2276_v33, %v2270_v24 }
 0x110   : > { %1873 = vst [vmem:[%s2238_s11 + $0x20] sm:$0xff] %v1733_v35   ;;  %v1187_v40 = vadd.f32 %v1967_v20, %v1186_v36  ;;  %v1319_v42 = vadd.f32 %v1318_v34, %v1256_v37 }
 0x111   : > { %1889 = vst [vmem:[%s2238_s11 + $0xa0] sm:$0xff] %v1813_v38  }
 0x112   : > { %v1320_v46 = vadd.f32 %v1319_v42, %v1257_v39  ;;  %v1971_v47 = vpop.f32.mrb[12].mxu0  ;;  %v1188_v48 = vadd.f32 %v1968_v28, %v1187_v40  ;;  %v2284_v49 = vpop.f32.mrb[12].mxu1 }
 0x113   : > { %v651_v51 = vpop.f32.mrb[13].mxu0  ;;  %v2286_v52 = vpop.f32.mrb[13].mxu1  ;;  %v1261_v6 = vmul.f32 %v1971_v47, %v1971_v47 }
 0x114   : > { %v1189_v53 = vadd.f32 %v1188_v48, %v651_v51  ;;  %v1259_v54 = vmul.f32 %v651_v51, %v651_v51  ;;  %v1321_v55 = vadd.f32 %v1320_v46, %v1258_v44  ;;  %v1972_v56 = vpop.f32.mrb[14].mxu0  ;;  %v2288_v57 = vpop.f32.mrb[14].mxu1 }
 0x115   : > { %v1748_v58 = vpack.c.bf16 %v1972_v56, %v1971_v47  ;;  %v654_v59 = vpop.f32.mrb[15].mxu0  ;;  %v1828_v60 = vpack.c.bf16 %v2288_v57, %v2284_v49  ;;  %v2292_v61 = vpop.f32.mrb[15].mxu1  ;;  %v1262_v10 = vmul.f32 %v1972_v56, %v1972_v56 }
 0x116   : > { %v1322_v63 = vadd.f32 %v1321_v55, %v1259_v54  ;;  %v1743_v1 = vpack.c.bf16 %v654_v59, %v651_v51  ;;  %v1190_v2 = vadd.f32 %v1189_v53, %v654_v59  ;;  %v1260_v3 = vmul.f32 %v654_v59, %v654_v59 }
 0x117   : > { %1876 = vst [vmem:[%s2238_s11 + $0x38] sm:$0xff] %v1748_v58   ;;  %1892 = vst [vmem:[%s2238_s11 + $0xb8] sm:$0xff] %v1828_v60   ;;  %v1823_v4 = vpack.c.bf16 %v2292_v61, %v2286_v52 }
 0x118   : > { %1875 = vst [vmem:[%s2238_s11 + $0x30] sm:$0xff] %v1743_v1   ;;  %v1191_v7 = vadd.f32 %v1971_v47, %v1190_v2  ;;  %v1323_v8 = vadd.f32 %v1322_v63, %v1260_v3 }
 0x119   : > { %1891 = vst [vmem:[%s2238_s11 + $0xb0] sm:$0xff] %v1823_v4  }
 0x11a   : > { %v1324_v11 = vadd.f32 %v1323_v8, %v1261_v6  ;;  %v1975_v12 = vpop.f32.mrb[16].mxu0  ;;  %v1192_v13 = vadd.f32 %v1972_v56, %v1191_v7  ;;  %v2300_v14 = vpop.f32.mrb[16].mxu1 }
 0x11b   : > { %v667_v15 = vpop.f32.mrb[17].mxu0  ;;  %v2302_v16 = vpop.f32.mrb[17].mxu1  ;;  %v1265_v35 = vmul.f32 %v1975_v12, %v1975_v12 }
 0x11c   : > { %v1193_v17 = vadd.f32 %v1192_v13, %v667_v15  ;;  %v1263_v18 = vmul.f32 %v667_v15, %v667_v15  ;;  %v1325_v19 = vadd.f32 %v1324_v11, %v1262_v10  ;;  %v1976_v20 = vpop.f32.mrb[18].mxu0  ;;  %v2304_v21 = vpop.f32.mrb[18].mxu1 }
 0x11d   : > { %v1758_v23 = vpack.c.bf16 %v1976_v20, %v1975_v12  ;;  %v670_v25 = vpop.f32.mrb[19].mxu0  ;;  %v1838_v26 = vpack.c.bf16 %v2304_v21, %v2300_v14  ;;  %v2308_v27 = vpop.f32.mrb[19].mxu1  ;;  %v1266_v38 = vmul.f32 %v1976_v20, %v1976_v20 }
 0x11e   : > { %v1326_v28 = vadd.f32 %v1325_v19, %v1263_v18  ;;  %v1753_v30 = vpack.c.bf16 %v670_v25, %v667_v15  ;;  %v1194_v31 = vadd.f32 %v1193_v17, %v670_v25  ;;  %v1264_v32 = vmul.f32 %v670_v25, %v670_v25 }
 0x11f   : > { %1878 = vst [vmem:[%s2238_s11 + $0x48] sm:$0xff] %v1758_v23   ;;  %1894 = vst [vmem:[%s2238_s11 + $0xc8] sm:$0xff] %v1838_v26   ;;  %v1833_v34 = vpack.c.bf16 %v2308_v27, %v2302_v16 }
 0x120   : > { %1877 = vst [vmem:[%s2238_s11 + $0x40] sm:$0xff] %v1753_v30   ;;  %v1195_v36 = vadd.f32 %v1975_v12, %v1194_v31  ;;  %v1327_v37 = vadd.f32 %v1326_v28, %v1264_v32 }
 0x121   : > { %1893 = vst [vmem:[%s2238_s11 + $0xc0] sm:$0xff] %v1833_v34  }
 0x122   : > { %v1328_v39 = vadd.f32 %v1327_v37, %v1265_v35  ;;  %v1979_v40 = vpop.f32.mrb[20].mxu0  ;;  %v1196_v42 = vadd.f32 %v1976_v20, %v1195_v36  ;;  %v2316_v44 = vpop.f32.mrb[20].mxu1 }
 0x123   : > { %v683_v46 = vpop.f32.mrb[21].mxu0  ;;  %v2318_v47 = vpop.f32.mrb[21].mxu1  ;;  %v1269_v6 = vmul.f32 %v1979_v40, %v1979_v40 }
 0x124   : > { %v1197_v48 = vadd.f32 %v1196_v42, %v683_v46  ;;  %v1267_v51 = vmul.f32 %v683_v46, %v683_v46  ;;  %v1329_v53 = vadd.f32 %v1328_v39, %v1266_v38  ;;  %v1980_v54 = vpop.f32.mrb[22].mxu0  ;;  %v2320_v55 = vpop.f32.mrb[22].mxu1 }
 0x125   : > { %v1768_v56 = vpack.c.bf16 %v1980_v54, %v1979_v40  ;;  %v686_v58 = vpop.f32.mrb[23].mxu0  ;;  %v1848_v59 = vpack.c.bf16 %v2320_v55, %v2316_v44  ;;  %v2324_v60 = vpop.f32.mrb[23].mxu1  ;;  %v1270_v10 = vmul.f32 %v1980_v54, %v1980_v54 }
 0x126   : > { %v1330_v63 = vadd.f32 %v1329_v53, %v1267_v51  ;;  %v1763_v1 = vpack.c.bf16 %v686_v58, %v683_v46  ;;  %v1198_v2 = vadd.f32 %v1197_v48, %v686_v58  ;;  %v1268_v3 = vmul.f32 %v686_v58, %v686_v58 }
 0x127   : > { %1880 = vst [vmem:[%s2238_s11 + $0x58] sm:$0xff] %v1768_v56   ;;  %1896 = vst [vmem:[%s2238_s11 + $0xd8] sm:$0xff] %v1848_v59   ;;  %v1843_v4 = vpack.c.bf16 %v2324_v60, %v2318_v47 }
 0x128   : > { %1879 = vst [vmem:[%s2238_s11 + $0x50] sm:$0xff] %v1763_v1   ;;  %v1199_v7 = vadd.f32 %v1979_v40, %v1198_v2  ;;  %v1331_v8 = vadd.f32 %v1330_v63, %v1268_v3 }
 0x129   : > { %1895 = vst [vmem:[%s2238_s11 + $0xd0] sm:$0xff] %v1843_v4  }
 0x12a   : > { %v1332_v11 = vadd.f32 %v1331_v8, %v1269_v6  ;;  %v1983_v12 = vpop.f32.mrb[24].mxu0  ;;  %v1200_v13 = vadd.f32 %v1980_v54, %v1199_v7  ;;  %v2332_v15 = vpop.f32.mrb[24].mxu1 }
 0x12b   : > { %v699_v17 = vpop.f32.mrb[25].mxu0  ;;  %v2334_v18 = vpop.f32.mrb[25].mxu1  ;;  %v1273_v39 = vmul.f32 %v1983_v12, %v1983_v12 }
 0x12c   : > { %v1201_v19 = vadd.f32 %v1200_v13, %v699_v17  ;;  %v1271_v20 = vmul.f32 %v699_v17, %v699_v17  ;;  %v1333_v23 = vadd.f32 %v1332_v11, %v1270_v10  ;;  %v1984_v25 = vpop.f32.mrb[26].mxu0  ;;  %v2336_v26 = vpop.f32.mrb[26].mxu1 }
 0x12d   : > { %v1778_v28 = vpack.c.bf16 %v1984_v25, %v1983_v12  ;;  %v702_v30 = vpop.f32.mrb[27].mxu0  ;;  %v1858_v31 = vpack.c.bf16 %v2336_v26, %v2332_v15  ;;  %v2340_v32 = vpop.f32.mrb[27].mxu1  ;;  %v1274_v46 = vmul.f32 %v1984_v25, %v1984_v25 }
 0x12e   : > { %v1334_v34 = vadd.f32 %v1333_v23, %v1271_v20  ;;  %v1773_v35 = vpack.c.bf16 %v702_v30, %v699_v17  ;;  %v1202_v36 = vadd.f32 %v1201_v19, %v702_v30  ;;  %v1272_v37 = vmul.f32 %v702_v30, %v702_v30 }
 0x12f   : > { %1882 = vst [vmem:[%s2238_s11 + $0x68] sm:$0xff] %v1778_v28   ;;  %1898 = vst [vmem:[%s2238_s11 + $0xe8] sm:$0xff] %v1858_v31   ;;  %v1853_v38 = vpack.c.bf16 %v2340_v32, %v2334_v18  ;;  %v1279_v31 = vmul.f32 %v2231_v43, %v2231_v43 }
 0x130   : > { %1881 = vst [vmem:[%s2238_s11 + $0x60] sm:$0xff] %v1773_v35   ;;  %v1203_v40 = vadd.f32 %v1983_v12, %v1202_v36  ;;  %v1335_v42 = vadd.f32 %v1334_v34, %v1272_v37 }
 0x131   : > { %1897 = vst [vmem:[%s2238_s11 + $0xe0] sm:$0xff] %v1853_v38   ;;  %v1280_v38 = vmul.f32 %v2244_v50, %v2244_v50 }
 0x132   : > { %v1336_v48 = vadd.f32 %v1335_v42, %v1273_v39  ;;  %v1987_v51 = vpop.f32.mrb[28].mxu0  ;;  %v1204_v53 = vadd.f32 %v1984_v25, %v1203_v40  ;;  %v2348_v54 = vpop.f32.mrb[28].mxu1  ;;  %v1281_v39 = vmul.f32 %v2229_v41, %v2229_v41 }
 0x133   : > { %v715_v56 = vpop.f32.mrb[29].mxu0  ;;  %v2350_v58 = vpop.f32.mrb[29].mxu1  ;;  %v1277_v19 = vmul.f32 %v1987_v51, %v1987_v51 }
 0x134   : > { %v1205_v59 = vadd.f32 %v1204_v53, %v715_v56  ;;  %v1275_v63 = vmul.f32 %v715_v56, %v715_v56  ;;  %v1337_v1 = vadd.f32 %v1336_v48, %v1274_v46  ;;  %v1988_v2 = vpop.f32.mrb[30].mxu0  ;;  %v2352_v3 = vpop.f32.mrb[30].mxu1  ;;  %v1282_v46 = vmul.f32 %v2240_v45, %v2240_v45 }
 0x135   : > { %v1788_v4 = vpack.c.bf16 %v1988_v2, %v1987_v51  ;;  %v718_v6 = vpop.f32.mrb[31].mxu0  ;;  %v1868_v7 = vpack.c.bf16 %v2352_v3, %v2348_v54  ;;  %v2356_v8 = vpop.f32.mrb[31].mxu1  ;;  %v1278_v25 = vmul.f32 %v1988_v2, %v1988_v2 }
 0x136   : > { %v1338_v10 = vadd.f32 %v1337_v1, %v1275_v63  ;;  %v1783_v11 = vpack.c.bf16 %v718_v6, %v715_v56  ;;  %v1206_v12 = vadd.f32 %v1205_v59, %v718_v6  ;;  %v1276_v13 = vmul.f32 %v718_v6, %v718_v6 }
 0x137   : > { %1884 = vst [vmem:[%s2238_s11 + $0x78] sm:$0xff] %v1788_v4   ;;  %1900 = vst [vmem:[%s2238_s11 + $0xf8] sm:$0xff] %v1868_v7   ;;  %v1863_v17 = vpack.c.bf16 %v2356_v8, %v2350_v58  ;;  %v1284_v63 = vmul.f32 %v2260_v9, %v2260_v9 }
 0x138   : > { %1883 = vst [vmem:[%s2238_s11 + $0x70] sm:$0xff] %v1783_v11   ;;  %v1207_v20 = vadd.f32 %v1987_v51, %v1206_v12  ;;  %v1339_v23 = vadd.f32 %v1338_v10, %v1276_v13  ;;  %v1288_v12 = vmul.f32 %v2276_v33, %v2276_v33 }
 0x139   : > { %1899 = vst [vmem:[%s2238_s11 + $0xf0] sm:$0xff] %v1863_v17  }
 0x13a   : > { %v1340_v28 = vadd.f32 %v1339_v23, %v1277_v19  ;;  %v1208_v30 = vadd.f32 %v1988_v2, %v1207_v20 }
 0x13c   : > { %v1209_v34 = vadd.f32 %v1208_v30, %v2231_v43  ;;  %v1341_v35 = vadd.f32 %v1340_v28, %v1278_v25  ;;  %v1283_v43 = vmul.f32 %v2254_v0, %v2254_v0  ;;  %v1292_v30 = vmul.f32 %v2292_v61, %v2292_v61 }
 0x13e   : > { %v1342_v36 = vadd.f32 %v1341_v35, %v1279_v31  ;;  %v1210_v37 = vadd.f32 %v1209_v34, %v2244_v50 }
 0x140   : > { %v1211_v40 = vadd.f32 %v2229_v41, %v1210_v37  ;;  %v1343_v42 = vadd.f32 %v1342_v36, %v1280_v38  ;;  %v1285_v41 = vmul.f32 %v2252_v62, %v2252_v62 }
 0x142   : > { %v1344_v48 = vadd.f32 %v1343_v42, %v1281_v39  ;;  %v1212_v51 = vadd.f32 %v2240_v45, %v1211_v40  ;;  %v1286_v45 = vmul.f32 %v2256_v5, %v2256_v5  ;;  %v1296_v40 = vmul.f32 %v2308_v27, %v2308_v27 }
 0x144   : > { %v1213_v53 = vadd.f32 %v1212_v51, %v2254_v0  ;;  %v1345_v56 = vadd.f32 %v1344_v48, %v1282_v46  ;;  %v1287_v0 = vmul.f32 %v2270_v24, %v2270_v24 }
 0x146   : > { %v1346_v59 = vadd.f32 %v1345_v56, %v1283_v43  ;;  %v1214_v50 = vadd.f32 %v1213_v53, %v2260_v9 }
 0x148   : > { %v1215_v1 = vadd.f32 %v2252_v62, %v1214_v50  ;;  %v1347_v2 = vadd.f32 %v1346_v59, %v1284_v63  ;;  %v1289_v62 = vmul.f32 %v2268_v22, %v2268_v22  ;;  %v1300_v59 = vmul.f32 %v2324_v60, %v2324_v60 }
 0x14a   : > { %v1348_v4 = vadd.f32 %v1347_v2, %v1285_v41  ;;  %v1216_v6 = vadd.f32 %v2256_v5, %v1215_v1  ;;  %v1290_v5 = vmul.f32 %v2272_v29, %v2272_v29 }
 0x14c   : > { %v1217_v7 = vadd.f32 %v1216_v6, %v2270_v24  ;;  %v1349_v10 = vadd.f32 %v1348_v4, %v1286_v45  ;;  %v1291_v24 = vmul.f32 %v2286_v52, %v2286_v52  ;;  %v1304_v6 = vmul.f32 %v2340_v32, %v2340_v32 }
 0x14e   : > { %v1350_v11 = vadd.f32 %v1349_v10, %v1287_v0  ;;  %v1218_v9 = vadd.f32 %v1217_v7, %v2276_v33 }
 0x150   : > { %v1219_v13 = vadd.f32 %v2268_v22, %v1218_v9  ;;  %v1351_v17 = vadd.f32 %v1350_v11, %v1288_v12  ;;  %v1293_v22 = vmul.f32 %v2284_v49, %v2284_v49 }
 0x152   : > { %v1352_v19 = vadd.f32 %v1351_v17, %v1289_v62  ;;  %v1220_v20 = vadd.f32 %v2272_v29, %v1219_v13  ;;  %v1294_v29 = vmul.f32 %v2288_v57, %v2288_v57  ;;  %v1308_v13 = vmul.f32 %v2356_v8, %v2356_v8 }
 0x154   : > { %v1221_v23 = vadd.f32 %v1220_v20, %v2286_v52  ;;  %v1353_v25 = vadd.f32 %v1352_v19, %v1290_v5  ;;  %v1295_v52 = vmul.f32 %v2302_v16, %v2302_v16 }
 0x156   : > { %v1354_v28 = vadd.f32 %v1353_v25, %v1291_v24  ;;  %v1222_v33 = vadd.f32 %v1221_v23, %v2292_v61 }
 0x158   : > { %v1223_v31 = vadd.f32 %v2284_v49, %v1222_v33  ;;  %v1355_v34 = vadd.f32 %v1354_v28, %v1292_v30  ;;  %v1297_v49 = vmul.f32 %v2300_v14, %v2300_v14 }
 0x15a   : > { %v1356_v35 = vadd.f32 %v1355_v34, %v1293_v22  ;;  %v1224_v36 = vadd.f32 %v2288_v57, %v1223_v31  ;;  %v1298_v57 = vmul.f32 %v2304_v21, %v2304_v21 }
 0x15c   : > { %v1225_v37 = vadd.f32 %v1224_v36, %v2302_v16  ;;  %v1357_v38 = vadd.f32 %v1356_v35, %v1294_v29  ;;  %v1299_v16 = vmul.f32 %v2318_v47, %v2318_v47 }
 0x15e   : > { %v1358_v39 = vadd.f32 %v1357_v38, %v1295_v52  ;;  %v1226_v61 = vadd.f32 %v1225_v37, %v2308_v27 }
 0x160   : > { %v1227_v42 = vadd.f32 %v2300_v14, %v1226_v61  ;;  %v1359_v46 = vadd.f32 %v1358_v39, %v1296_v40  ;;  %v1301_v14 = vmul.f32 %v2316_v44, %v2316_v44 }
 0x162   : > { %v1360_v48 = vadd.f32 %v1359_v46, %v1297_v49  ;;  %v1228_v51 = vadd.f32 %v2304_v21, %v1227_v42  ;;  %v1302_v21 = vmul.f32 %v2320_v55, %v2320_v55 }
 0x164   : > { %v1229_v43 = vadd.f32 %v1228_v51, %v2318_v47  ;;  %v1361_v53 = vadd.f32 %v1360_v48, %v1298_v57  ;;  %v1303_v47 = vmul.f32 %v2334_v18, %v2334_v18 }
 0x166   : > { %v1362_v56 = vadd.f32 %v1361_v53, %v1299_v16  ;;  %v1230_v27 = vadd.f32 %v1229_v43, %v2324_v60 }
 0x168   : > { %v1231_v50 = vadd.f32 %v2316_v44, %v1230_v27  ;;  %v1363_v63 = vadd.f32 %v1362_v56, %v1300_v59  ;;  %v1305_v44 = vmul.f32 %v2332_v15, %v2332_v15 }
 0x16a   : > { %v1364_v41 = vadd.f32 %v1363_v63, %v1301_v14  ;;  %v1232_v1 = vadd.f32 %v2320_v55, %v1231_v50  ;;  %v1306_v55 = vmul.f32 %v2336_v26, %v2336_v26 }
 0x16c   : > { %v1233_v2 = vadd.f32 %v1232_v1, %v2334_v18  ;;  %v1365_v45 = vadd.f32 %v1364_v41, %v1302_v21  ;;  %v1307_v18 = vmul.f32 %v2350_v58, %v2350_v58 }
 0x16e   : > { %v1366_v4 = vadd.f32 %v1365_v45, %v1303_v47  ;;  %v1234_v60 = vadd.f32 %v1233_v2, %v2340_v32 }
 0x170   : > { %v1235_v0 = vadd.f32 %v2332_v15, %v1234_v60  ;;  %v1367_v7 = vadd.f32 %v1366_v4, %v1304_v6  ;;  %v1309_v15 = vmul.f32 %v2348_v54, %v2348_v54 }
 0x172   : > { %v1368_v10 = vadd.f32 %v1367_v7, %v1305_v44  ;;  %v1236_v11 = vadd.f32 %v2336_v26, %v1235_v0  ;;  %v1310_v26 = vmul.f32 %v2352_v3, %v2352_v3 }
 0x174   : > { %v1237_v9 = vadd.f32 %v1236_v11, %v2350_v58  ;;  %v1369_v12 = vadd.f32 %v1368_v10, %v1306_v55 }
 0x176   : > { %v1370_v62 = vadd.f32 %v1369_v12, %v1307_v18  ;;  %v1238_v32 = vadd.f32 %v1237_v9, %v2356_v8 }
 0x178   : > { %v1239_v17 = vadd.f32 %v2348_v54, %v1238_v32  ;;  %v1371_v5 = vadd.f32 %v1370_v62, %v1308_v13 }
 0x17a   : > { %v1240_v19 = vadd.f32 %v2352_v3, %v1239_v17  ;;  %v1372_v58 = vadd.f32 %v1371_v5, %v1309_v15 }
 0x17c   : > { %v1241_v20 = vrot.slane %v1240_v19, 4  ;;  %v1373_v24 = vadd.f32 %v1372_v58, %v1310_v26 }
 0x17e   : > { %v1242_v23 = vadd.f32 %v1241_v20, %v1240_v19  ;;  %v1374_v25 = vrot.slane %v1373_v24, 4 }
 0x180   : > { %v1243_v28 = vrot.slane %v1242_v23, 2  ;;  %v1375_v33 = vadd.f32 %v1374_v25, %v1373_v24 }
 0x182   : > { %v1244_v8 = vadd.f32 %v1243_v28, %v1242_v23  ;;  %v1376_v30 = vrot.slane %v1375_v33, 2 }
 0x184   : > { %v1245_v22 = vrot.slane %v1244_v8, 1  ;;  %v1377_v31 = vadd.f32 %v1376_v30, %v1375_v33 }
 0x186   : > { %v1378_v34 = vrot.slane %v1377_v31, 1  ;;  %v1246_v54 = vadd.f32 %v1245_v22, %v1244_v8 }
 0x188   : > { %v1379_v3 = vadd.f32 %v1378_v34, %v1377_v31 }
 0x18a   : > { %v1381_v29 = vsel %vm1380_vm0, %v1246_v54, %v1379_v3 }
 0x18b   : > { %1386 = vst [vmem:[%s247_s19] sm:$0x3] %v1381_v29 }
 0x18c PF: > { %s14_s14 = sadd.s32 1, %s2123_s14   ;;  %s2477_s12 = smov %s2119_s13 }
 0x18d   : > { %p11_p5 = scmp.ge.s32.totalorder %s14_s14, 4   ;;  %s2478_s13 = smov %s2480_s15 }
 0x18f   :  { %13 = sbr.rel (!%p11_p5) target bundleno = 2 (0x2), region = 78 }

// kernel: _lambda_.4
= control target key start
LH: loop header
LB: loop body
LE: loop exit
PB: predicated region body
PF: predicated region fallthrough
CT: control target
= control target key end

     0   :  { %s2353_s12 = smov 0   ;;  %s2355_s13 = smov 0   ;;  %s2766_s0 = inlined_call_operand.vmem [shape: bf16[2,512,256], index: 0, kind: input, shape index: {}]   ;;  %s2767_s1 = inlined_call_operand.vmem [shape: bf16[256,128], index: 1, kind: input, shape index: {}]   ;;  %s2768_s2 = inlined_call_operand.vmem [shape: bf16[2,512,128], index: 2, kind: output, shape index: {0}]   ;;  %s2769_s3 = inlined_call_operand.vmem [shape: f32[2,1,2,128], index: 3, kind: output, shape index: {1}]  }
   0x1   :  { %s2357_s14 = smov 0  }
   0x2 LB: > { %s33_s15 = sadd.s32 1, %s2326_s13  ;;  %p1730_p0 = scmp.ge.s32.totalorder %s2330_s14, 1  ;;  %s2330_s14 = sphi %s2357_s14, %s14_s14   ;;  %s2326_s13 = sphi %s2355_s13, %s2771_s13   ;;  %s2322_s12 = sphi %s2353_s12, %s2770_s12  }
   0x3   : > { %p35_p1 = scmp.ge.s32.totalorder %s33_s15, 2  ;;  %p177_p2 = scmp.lt.s32.totalorder %s2330_s14, 3 }
   0x5   : > { %s2773_s15 = smov (%p35_p1, %s33_s15), 0  ;;  %p178_p3 = pnand %p1730_p0, %p177_p2 }
   0x6   : > { %v2196_v0 = vld [vmem:[%s2767_s1] sm:$0xff] (!%p178_p3)   ;;  %v2332_v1 = vmov (!%p178_p3), 0   ;;  %v2197_v2 = vld [vmem:[%s2767_s1 + $0x8] sm:$0xff] (!%p178_p3)   ;;  %p221_p4 = scmp.lt.s32.totalorder (!%p178_p3), %s2322_s12, 1  ;;  %v2198_v3 = vld [vmem:[%s2767_s1 + $0x10] sm:$0xff] (!%p178_p3)   ;;  %vm1575_vm0 = vcmask (!%p178_p3), 1040384  }
   0x7   : > { %181 = sbr.rel (%p178_p3) target bundleno = 487 (0x1e7), region = 28  ;;  %764 = vmatprep.subr.bf16.mxu0 (!%p178_p3), %v2332_v1  ;;  %2139 = vmatprep.subr.bf16.mxu1 (!%p178_p3), %v2332_v1  ;;  %v2199_v4 = vld [vmem:[%s2767_s1 + $0x18] sm:$0xff] (!%p178_p3)   ;;  %v2200_v5 = vld [vmem:[%s2767_s1 + $0x20] sm:$0xff] (!%p178_p3)   ;;  %v2201_v7 = vld [vmem:[%s2767_s1 + $0x28] sm:$0xff] (!%p178_p3)  }
   0x8   : > { %765 = vmatpush1.bf16.msra.mxu0 (!%p178_p3), %v2196_v0  ;;  %2155 = vmatpush1.bf16.msra.mxu1 (!%p178_p3), %v2196_v0  ;;  %v2202_v8 = vld [vmem:[%s2767_s1 + $0x30] sm:$0xff] (!%p178_p3)   ;;  %v2203_v9 = vld [vmem:[%s2767_s1 + $0x38] sm:$0xff] (!%p178_p3)   ;;  %v2204_v11 = vld [vmem:[%s2767_s1 + $0x40] sm:$0xff] (!%p178_p3)  }
   0x9   : > { %766 = vmatprep.subr.bf16.mxu0 (!%p178_p3), %v2332_v1  ;;  %2140 = vmatprep.subr.bf16.mxu1 (!%p178_p3), %v2332_v1  ;;  %v2205_v12 = vld [vmem:[%s2767_s1 + $0x48] sm:$0xff] (!%p178_p3)   ;;  %v2206_v13 = vld [vmem:[%s2767_s1 + $0x50] sm:$0xff] (!%p178_p3)   ;;  %v2207_v14 = vld [vmem:[%s2767_s1 + $0x58] sm:$0xff] (!%p178_p3)  }
   0xa   : > { %v2208_v15 = vld [vmem:[%s2767_s1 + $0x60] sm:$0xff] (!%p178_p3)   ;;  %v2209_v16 = vld [vmem:[%s2767_s1 + $0x68] sm:$0xff] (!%p178_p3)   ;;  %v2210_v17 = vld [vmem:[%s2767_s1 + $0x70] sm:$0xff] (!%p178_p3)  }
   0xb   : > { %v2211_v18 = vld [vmem:[%s2767_s1 + $0x78] sm:$0xff] (!%p178_p3)  }
   0xc   : > { %767 = vmatpush1.bf16.msra.mxu0 (!%p178_p3), %v2197_v2  ;;  %2156 = vmatpush1.bf16.msra.mxu1 (!%p178_p3), %v2197_v2 }
   0xd   : > { %768 = vmatprep.subr.bf16.mxu0 (!%p178_p3), %v2332_v1  ;;  %2141 = vmatprep.subr.bf16.mxu1 (!%p178_p3), %v2332_v1 }
   0xe   : > { %s2775_s12 = smov (!%p221_p4, %s2322_s12), 1 }
   0xf   : > { %s1882_s24 = sshll.u32 %s2775_s12, 9  ;;  %s1883_s30 = sshll.u32 %s2775_s12, 8 }
  0x10   : > { %769 = vmatpush1.bf16.msra.mxu0 %v2198_v3  ;;  %2157 = vmatpush1.bf16.msra.mxu1 %v2198_v3  ;;  %s2400_s29 = scalar_lea.vmem %s2766_s0, %s1882_s24  ;;  %s2529_s6 = scalar_lea.vmem %s2768_s2, %s1883_s30 }
  0x11   : > { %770 = vmatprep.subr.bf16.mxu0 %v2332_v1  ;;  %2142 = vmatprep.subr.bf16.mxu1 %v2332_v1  ;;  %v2214_v6 = vld [vmem:[%s2400_s29 + $0x4] ss:$8 sps:$4 sm:$0xff]   ;;  %v2212_v19 = vld [vmem:[%s2400_s29] ss:$8 sps:$4 sm:$0xff]   ;;  %v2215_v21 = vld [vmem:[%s2400_s29 + $0x14] ss:$8 sps:$4 sm:$0xff]  }
  0x12   : > { %796 = vmatprep.mubr.bf16.mxu0 %v2214_v6  ;;  %v2238_v10 = vld [vmem:[%s2400_s29 + $0x104] ss:$8 sps:$4 sm:$0xff]   ;;  %v2236_v20 = vld [vmem:[%s2400_s29 + $0x100] ss:$8 sps:$4 sm:$0xff]   ;;  %v2242_v22 = vld [vmem:[%s2400_s29 + $0x114] ss:$8 sps:$4 sm:$0xff]  }
  0x13   : > { %924 = vmatprep.mubr.bf16.mxu1 %v2238_v10  ;;  %v2217_v23 = vld [vmem:[%s2400_s29 + $0x10] ss:$8 sps:$4 sm:$0xff]   ;;  %v2218_v25 = vld [vmem:[%s2400_s29 + $0x24] ss:$8 sps:$4 sm:$0xff]   ;;  %v2220_v27 = vld [vmem:[%s2400_s29 + $0x20] ss:$8 sps:$4 sm:$0xff]  }
  0x14   : > { %771 = vmatpush1.bf16.msra.mxu0 %v2199_v4  ;;  %2158 = vmatpush1.bf16.msra.mxu1 %v2199_v4  ;;  %v2244_v24 = vld [vmem:[%s2400_s29 + $0x110] ss:$8 sps:$4 sm:$0xff]   ;;  %v2248_v26 = vld [vmem:[%s2400_s29 + $0x124] ss:$8 sps:$4 sm:$0xff]   ;;  %v2250_v28 = vld [vmem:[%s2400_s29 + $0x120] ss:$8 sps:$4 sm:$0xff]  }
  0x15   : > { %772 = vmatprep.subr.bf16.mxu0 %v2332_v1  ;;  %2143 = vmatprep.subr.bf16.mxu1 %v2332_v1  ;;  %v2221_v29 = vld [vmem:[%s2400_s29 + $0x34] ss:$8 sps:$4 sm:$0xff]   ;;  %v2223_v31 = vld [vmem:[%s2400_s29 + $0x30] ss:$8 sps:$4 sm:$0xff]   ;;  %v2224_v33 = vld [vmem:[%s2400_s29 + $0x44] ss:$8 sps:$4 sm:$0xff]  }
  0x16   : > { %v2254_v30 = vld [vmem:[%s2400_s29 + $0x134] ss:$8 sps:$4 sm:$0xff]   ;;  %v2256_v32 = vld [vmem:[%s2400_s29 + $0x130] ss:$8 sps:$4 sm:$0xff]   ;;  %v2260_v34 = vld [vmem:[%s2400_s29 + $0x144] ss:$8 sps:$4 sm:$0xff]  }
  0x17   : > { %v2226_v35 = vld [vmem:[%s2400_s29 + $0x40] ss:$8 sps:$4 sm:$0xff]   ;;  %v2227_v37 = vld [vmem:[%s2400_s29 + $0x54] ss:$8 sps:$4 sm:$0xff]   ;;  %v2229_v39 = vld [vmem:[%s2400_s29 + $0x50] ss:$8 sps:$4 sm:$0xff]  }
  0x18   : > { %773 = vmatpush1.bf16.msra.mxu0 %v2200_v5  ;;  %2159 = vmatpush1.bf16.msra.mxu1 %v2200_v5  ;;  %v2262_v36 = vld [vmem:[%s2400_s29 + $0x140] ss:$8 sps:$4 sm:$0xff]   ;;  %v2266_v38 = vld [vmem:[%s2400_s29 + $0x154] ss:$8 sps:$4 sm:$0xff]   ;;  %v2268_v40 = vld [vmem:[%s2400_s29 + $0x150] ss:$8 sps:$4 sm:$0xff]  }
  0x19   : > { %774 = vmatprep.subr.bf16.mxu0 %v2332_v1  ;;  %2144 = vmatprep.subr.bf16.mxu1 %v2332_v1  ;;  %v2230_v41 = vld [vmem:[%s2400_s29 + $0x64] ss:$8 sps:$4 sm:$0xff]   ;;  %v2232_v43 = vld [vmem:[%s2400_s29 + $0x60] ss:$8 sps:$4 sm:$0xff]   ;;  %v2233_v45 = vld [vmem:[%s2400_s29 + $0x74] ss:$8 sps:$4 sm:$0xff]  }
  0x1a   : > { %v2272_v42 = vld [vmem:[%s2400_s29 + $0x164] ss:$8 sps:$4 sm:$0xff]   ;;  %v2274_v44 = vld [vmem:[%s2400_s29 + $0x160] ss:$8 sps:$4 sm:$0xff]   ;;  %v2278_v46 = vld [vmem:[%s2400_s29 + $0x174] ss:$8 sps:$4 sm:$0xff]  }
  0x1b   : > { %v2235_v47 = vld [vmem:[%s2400_s29 + $0x70] ss:$8 sps:$4 sm:$0xff]   ;;  %v2239_v49 = vld [vmem:[%s2400_s29 + $0x84] ss:$8 sps:$4 sm:$0xff]   ;;  %v2241_v51 = vld [vmem:[%s2400_s29 + $0x80] ss:$8 sps:$4 sm:$0xff]  }
  0x1c   : > { %775 = vmatpush1.bf16.msra.mxu0 %v2201_v7  ;;  %2160 = vmatpush1.bf16.msra.mxu1 %v2201_v7  ;;  %v2280_v48 = vld [vmem:[%s2400_s29 + $0x170] ss:$8 sps:$4 sm:$0xff]   ;;  %v2284_v50 = vld [vmem:[%s2400_s29 + $0x184] ss:$8 sps:$4 sm:$0xff]   ;;  %v2286_v52 = vld [vmem:[%s2400_s29 + $0x180] ss:$8 sps:$4 sm:$0xff]  }
  0x1d   : > { %776 = vmatprep.subr.bf16.mxu0 %v2332_v1  ;;  %2145 = vmatprep.subr.bf16.mxu1 %v2332_v1  ;;  %v2245_v53 = vld [vmem:[%s2400_s29 + $0x94] ss:$8 sps:$4 sm:$0xff]   ;;  %v2247_v55 = vld [vmem:[%s2400_s29 + $0x90] ss:$8 sps:$4 sm:$0xff]   ;;  %v2251_v57 = vld [vmem:[%s2400_s29 + $0xa4] ss:$8 sps:$4 sm:$0xff]  }
  0x1e   : > { %v2287_v54 = vld [vmem:[%s2400_s29 + $0x194] ss:$8 sps:$4 sm:$0xff]   ;;  %v2289_v56 = vld [vmem:[%s2400_s29 + $0x190] ss:$8 sps:$4 sm:$0xff]   ;;  %v2290_v58 = vld [vmem:[%s2400_s29 + $0x1a4] ss:$8 sps:$4 sm:$0xff]  }
  0x1f   : > { %v2253_v59 = vld [vmem:[%s2400_s29 + $0xa0] ss:$8 sps:$4 sm:$0xff]   ;;  %v2257_v61 = vld [vmem:[%s2400_s29 + $0xb4] ss:$8 sps:$4 sm:$0xff]   ;;  %v2259_v63 = vld [vmem:[%s2400_s29 + $0xb0] ss:$8 sps:$4 sm:$0xff]  }
  0x20   : > { %777 = vmatpush1.bf16.msra.mxu0 %v2202_v8  ;;  %2161 = vmatpush1.bf16.msra.mxu1 %v2202_v8  ;;  %v2292_v60 = vld [vmem:[%s2400_s29 + $0x1a0] ss:$8 sps:$4 sm:$0xff]   ;;  %v2293_v62 = vld [vmem:[%s2400_s29 + $0x1b4] ss:$8 sps:$4 sm:$0xff]   ;;  %v2295_v0 = vld [vmem:[%s2400_s29 + $0x1b0] ss:$8 sps:$4 sm:$0xff]  }
  0x21   : > { %778 = vmatprep.subr.bf16.mxu0 %v2332_v1  ;;  %2146 = vmatprep.subr.bf16.mxu1 %v2332_v1  ;;  %v2296_v2 = vld [vmem:[%s2400_s29 + $0x1c4] ss:$8 sps:$4 sm:$0xff]   ;;  %v2265_v3 = vld [vmem:[%s2400_s29 + $0xc0] ss:$8 sps:$4 sm:$0xff]   ;;  %v2269_v5 = vld [vmem:[%s2400_s29 + $0xd4] ss:$8 sps:$4 sm:$0xff]  }
  0x22   : > { %v2298_v4 = vld [vmem:[%s2400_s29 + $0x1c0] ss:$8 sps:$4 sm:$0xff]   ;;  %v2299_v6 = vld [vmem:[%s2400_s29 + $0x1d4] ss:$8 sps:$4 sm:$0xff]   ;;  %v2271_v7 = vld [vmem:[%s2400_s29 + $0xd0] ss:$8 sps:$4 sm:$0xff]  }
  0x23   : > { %v2301_v8 = vld [vmem:[%s2400_s29 + $0x1d0] ss:$8 sps:$4 sm:$0xff]   ;;  %v2302_v10 = vld [vmem:[%s2400_s29 + $0x1e4] ss:$8 sps:$4 sm:$0xff]  }
  0x24   : > { %779 = vmatpush1.bf16.msra.mxu0 %v2203_v9  ;;  %2162 = vmatpush1.bf16.msra.mxu1 %v2203_v9  ;;  %v2275_v9 = vld [vmem:[%s2400_s29 + $0xe4] ss:$8 sps:$4 sm:$0xff]  }
  0x25   : > { %780 = vmatprep.subr.bf16.mxu0 %v2332_v1  ;;  %2147 = vmatprep.subr.bf16.mxu1 %v2332_v1 }
  0x28   : > { %781 = vmatpush1.bf16.msra.mxu0 %v2204_v11  ;;  %2163 = vmatpush1.bf16.msra.mxu1 %v2204_v11  ;;  %v2277_v11 = vld [vmem:[%s2400_s29 + $0xe0] ss:$8 sps:$4 sm:$0xff]  }
  0x29   : > { %782 = vmatprep.subr.bf16.mxu0 %v2332_v1  ;;  %2148 = vmatprep.subr.bf16.mxu1 %v2332_v1 }
  0x2c   : > { %783 = vmatpush1.bf16.msra.mxu0 %v2205_v12  ;;  %2164 = vmatpush1.bf16.msra.mxu1 %v2205_v12  ;;  %v2304_v12 = vld [vmem:[%s2400_s29 + $0x1e0] ss:$8 sps:$4 sm:$0xff]  }
  0x2d   : > { %784 = vmatprep.subr.bf16.mxu0 %v2332_v1  ;;  %2149 = vmatprep.subr.bf16.mxu1 %v2332_v1 }
  0x30   : > { %785 = vmatpush1.bf16.msra.mxu0 %v2206_v13  ;;  %2165 = vmatpush1.bf16.msra.mxu1 %v2206_v13  ;;  %v2281_v13 = vld [vmem:[%s2400_s29 + $0xf4] ss:$8 sps:$4 sm:$0xff]  }
  0x31   : > { %786 = vmatprep.subr.bf16.mxu0 %v2332_v1  ;;  %2150 = vmatprep.subr.bf16.mxu1 %v2332_v1 }
  0x34   : > { %787 = vmatpush1.bf16.msra.mxu0 %v2207_v14  ;;  %2166 = vmatpush1.bf16.msra.mxu1 %v2207_v14  ;;  %v2305_v14 = vld [vmem:[%s2400_s29 + $0x1f4] ss:$8 sps:$4 sm:$0xff]  }
  0x35   : > { %788 = vmatprep.subr.bf16.mxu0 %v2332_v1  ;;  %2151 = vmatprep.subr.bf16.mxu1 %v2332_v1 }
  0x38   : > { %789 = vmatpush1.bf16.msra.mxu0 %v2208_v15  ;;  %2167 = vmatpush1.bf16.msra.mxu1 %v2208_v15  ;;  %v2283_v15 = vld [vmem:[%s2400_s29 + $0xf0] ss:$8 sps:$4 sm:$0xff]  }
  0x39   : > { %790 = vmatprep.subr.bf16.mxu0 %v2332_v1  ;;  %2152 = vmatprep.subr.bf16.mxu1 %v2332_v1 }
  0x3c   : > { %791 = vmatpush1.bf16.msra.mxu0 %v2209_v16  ;;  %2168 = vmatpush1.bf16.msra.mxu1 %v2209_v16  ;;  %v2307_v16 = vld [vmem:[%s2400_s29 + $0x1f0] ss:$8 sps:$4 sm:$0xff]  }
  0x3d   : > { %792 = vmatprep.subr.bf16.mxu0 %v2332_v1  ;;  %2153 = vmatprep.subr.bf16.mxu1 %v2332_v1 }
  0x40   : > { %793 = vmatpush1.bf16.msra.mxu0 %v2210_v17  ;;  %2169 = vmatpush1.bf16.msra.mxu1 %v2210_v17 }
  0x41   : > { %794 = vmatprep.subr.bf16.mxu0 %v2332_v1  ;;  %2154 = vmatprep.subr.bf16.mxu1 %v2332_v1  ;;  %v2263_v1 = vld [vmem:[%s2400_s29 + $0xc4] ss:$8 sps:$4 sm:$0xff]   ;;  %s1735_s29 = sshll.u32 %s2775_s12, 1 }
  0x42   : > { %s250_s9 = scalar_lea.vmem %s2769_s3, %s1735_s29 }
  0x44   : > { %795 = vmatpush1.bf16.msra.mxu0 %v2211_v18  ;;  %2170 = vmatpush1.bf16.msra.mxu1 %v2211_v18 }
  0x47   : > { %797 = vmatmul.mubr.bf16.vlgmr.msra.gmra.mrb[0].mxu0 %v2212_v19  ;;  %925 = vmatmul.mubr.bf16.vlgmr.msra.gmra.mrb[0].mxu1 %v2236_v20 }
  0x48   : > { %804 = vmatprep.mubr.bf16.mxu0 %v2215_v21  ;;  %932 = vmatprep.mubr.bf16.mxu1 %v2242_v22 }
  0x4f   : > { %805 = vmatmul.mubr.bf16.gmra.mrb[4].mxu0 %v2217_v23  ;;  %933 = vmatmul.mubr.bf16.gmra.mrb[4].mxu1 %v2244_v24 }
  0x50   : > { %812 = vmatprep.mubr.bf16.mxu0 %v2218_v25  ;;  %940 = vmatprep.mubr.bf16.mxu1 %v2248_v26 }
  0x57   : > { %813 = vmatmul.mubr.bf16.gmra.mrb[8].mxu0 %v2220_v27  ;;  %941 = vmatmul.mubr.bf16.gmra.mrb[8].mxu1 %v2250_v28 }
  0x58   : > { %820 = vmatprep.mubr.bf16.mxu0 %v2221_v29  ;;  %948 = vmatprep.mubr.bf16.mxu1 %v2254_v30 }
  0x5f   : > { %821 = vmatmul.mubr.bf16.gmra.mrb[12].mxu0 %v2223_v31  ;;  %949 = vmatmul.mubr.bf16.gmra.mrb[12].mxu1 %v2256_v32 }
  0x60   : > { %828 = vmatprep.mubr.bf16.mxu0 %v2224_v33  ;;  %956 = vmatprep.mubr.bf16.mxu1 %v2260_v34 }
  0x67   : > { %829 = vmatmul.mubr.bf16.gmra.mrb[16].mxu0 %v2226_v35  ;;  %957 = vmatmul.mubr.bf16.gmra.mrb[16].mxu1 %v2262_v36 }
  0x68   : > { %836 = vmatprep.mubr.bf16.mxu0 %v2227_v37  ;;  %964 = vmatprep.mubr.bf16.mxu1 %v2266_v38 }
  0x6f   : > { %837 = vmatmul.mubr.bf16.gmra.mrb[20].mxu0 %v2229_v39  ;;  %965 = vmatmul.mubr.bf16.gmra.mrb[20].mxu1 %v2268_v40 }
  0x70   : > { %844 = vmatprep.mubr.bf16.mxu0 %v2230_v41  ;;  %972 = vmatprep.mubr.bf16.mxu1 %v2272_v42 }
  0x77   : > { %845 = vmatmul.mubr.bf16.gmra.mrb[24].mxu0 %v2232_v43  ;;  %973 = vmatmul.mubr.bf16.gmra.mrb[24].mxu1 %v2274_v44 }
  0x78   : > { %852 = vmatprep.mubr.bf16.mxu0 %v2233_v45  ;;  %980 = vmatprep.mubr.bf16.mxu1 %v2278_v46 }
  0x7f   : > { %853 = vmatmul.mubr.bf16.gmra.mrb[28].mxu0 %v2235_v47  ;;  %981 = vmatmul.mubr.bf16.gmra.mrb[28].mxu1 %v2280_v48 }
  0x80   : > { %860 = vmatprep.mubr.bf16.mxu0 %v2239_v49  ;;  %988 = vmatprep.mubr.bf16.mxu1 %v2284_v50 }
  0x87   : > { %861 = vmatmul.mubr.bf16.gmra.mrb[32].mxu0 %v2241_v51  ;;  %989 = vmatmul.mubr.bf16.gmra.mrb[32].mxu1 %v2286_v52 }
  0x88   : > { %868 = vmatprep.mubr.bf16.mxu0 %v2245_v53  ;;  %996 = vmatprep.mubr.bf16.mxu1 %v2287_v54 }
  0x8f   : > { %869 = vmatmul.mubr.bf16.gmra.mrb[36].mxu0 %v2247_v55  ;;  %997 = vmatmul.mubr.bf16.gmra.mrb[36].mxu1 %v2289_v56 }
  0x90   : > { %876 = vmatprep.mubr.bf16.mxu0 %v2251_v57  ;;  %1004 = vmatprep.mubr.bf16.mxu1 %v2290_v58 }
  0x97   : > { %877 = vmatmul.mubr.bf16.gmra.mrb[40].mxu0 %v2253_v59  ;;  %1005 = vmatmul.mubr.bf16.gmra.mrb[40].mxu1 %v2292_v60 }
  0x98   : > { %884 = vmatprep.mubr.bf16.mxu0 %v2257_v61  ;;  %1012 = vmatprep.mubr.bf16.mxu1 %v2293_v62 }
  0x9f   : > { %885 = vmatmul.mubr.bf16.gmra.mrb[44].mxu0 %v2259_v63  ;;  %1013 = vmatmul.mubr.bf16.gmra.mrb[44].mxu1 %v2295_v0 }
  0xa0   : > { %892 = vmatprep.mubr.bf16.mxu0 %v2263_v1  ;;  %1020 = vmatprep.mubr.bf16.mxu1 %v2296_v2 }
  0xa7   : > { %893 = vmatmul.mubr.bf16.gmra.mrb[48].mxu0 %v2265_v3  ;;  %1021 = vmatmul.mubr.bf16.gmra.mrb[48].mxu1 %v2298_v4 }
  0xa8   : > { %900 = vmatprep.mubr.bf16.mxu0 %v2269_v5  ;;  %1028 = vmatprep.mubr.bf16.mxu1 %v2299_v6 }
  0xaf   : > { %901 = vmatmul.mubr.bf16.gmra.mrb[52].mxu0 %v2271_v7  ;;  %1029 = vmatmul.mubr.bf16.gmra.mrb[52].mxu1 %v2301_v8 }
  0xb0   : > { %908 = vmatprep.mubr.bf16.mxu0 %v2275_v9  ;;  %1036 = vmatprep.mubr.bf16.mxu1 %v2302_v10 }
  0xb7   : > { %909 = vmatmul.mubr.bf16.gmra.mrb[56].mxu0 %v2277_v11  ;;  %1037 = vmatmul.mubr.bf16.gmra.mrb[56].mxu1 %v2304_v12 }
  0xb8   : > { %916 = vmatprep.mubr.bf16.mxu0 %v2281_v13  ;;  %1044 = vmatprep.mubr.bf16.mxu1 %v2305_v14 }
  0xbf   : > { %917 = vmatmul.mubr.bf16.gmra.mrb[60].mxu0 %v2283_v15  ;;  %1045 = vmatmul.mubr.bf16.gmra.mrb[60].mxu1 %v2307_v16 }
 0x11a   : > { %v798_v17 = vpop.f32.mrb[0].mxu0  ;;  %v2524_v18 = vpop.f32.mrb[0].mxu1 }
 0x11b   : > { %v800_v19 = vpop.f32.mrb[1].mxu0  ;;  %v928_v20 = vpop.f32.mrb[1].mxu1  ;;  %v1442_v21 = vmul.f32 %v798_v17, %v798_v17 }
 0x11c   : > { %v801_v22 = vpop.f32.mrb[2].mxu0  ;;  %v2531_v23 = vpop.f32.mrb[2].mxu1 }
 0x11d   : > { %v1951_v24 = vpack.c.bf16 %v801_v22, %v798_v17  ;;  %v1373_v25 = vadd.f32 %v801_v22, %v798_v17  ;;  %v1443_v26 = vmul.f32 %v801_v22, %v801_v22  ;;  %v803_v27 = vpop.f32.mrb[3].mxu0  ;;  %v2031_v28 = vpack.c.bf16 %v2531_v23, %v2524_v18  ;;  %v931_v29 = vpop.f32.mrb[3].mxu1 }
 0x11f   : > { %1952 = vst [vmem:[%s2529_s6] sm:$0xff] %v1951_v24   ;;  %v1506_v30 = vadd.f32 %v1443_v26, %v1442_v21  ;;  %2123 = vst [vmem:[%s2529_s6 + $0x80] sm:$0xff] %v2031_v28  }
 0x122   : > { %v806_v31 = vpop.f32.mrb[4].mxu0  ;;  %v2537_v32 = vpop.f32.mrb[4].mxu1 }
 0x123   : > { %v1374_v33 = vadd.f32 %v1373_v25, %v806_v31  ;;  %v1444_v34 = vmul.f32 %v806_v31, %v806_v31  ;;  %v808_v35 = vpop.f32.mrb[5].mxu0  ;;  %v936_v36 = vpop.f32.mrb[5].mxu1 }
 0x124   : > { %v809_v37 = vpop.f32.mrb[6].mxu0  ;;  %v2539_v38 = vpop.f32.mrb[6].mxu1 }
 0x125   : > { %v1507_v39 = vadd.f32 %v1506_v30, %v1444_v34  ;;  %v1956_v40 = vpack.c.bf16 %v809_v37, %v806_v31  ;;  %v1375_v41 = vadd.f32 %v1374_v33, %v809_v37  ;;  %v1445_v42 = vmul.f32 %v809_v37, %v809_v37  ;;  %v811_v43 = vpop.f32.mrb[7].mxu0  ;;  %v939_v44 = vpop.f32.mrb[7].mxu1 }
 0x126   : > { %v2036_v45 = vpack.c.bf16 %v2539_v38, %v2537_v32 }
 0x127   : > { %2108 = vst [vmem:[%s2529_s6 + $0x8] sm:$0xff] %v1956_v40   ;;  %v1508_v46 = vadd.f32 %v1507_v39, %v1445_v42 }
 0x128   : > { %2124 = vst [vmem:[%s2529_s6 + $0x88] sm:$0xff] %v2036_v45  }
 0x12a   : > { %v814_v47 = vpop.f32.mrb[8].mxu0  ;;  %v2545_v48 = vpop.f32.mrb[8].mxu1 }
 0x12b   : > { %v1376_v49 = vadd.f32 %v1375_v41, %v814_v47  ;;  %v1446_v50 = vmul.f32 %v814_v47, %v814_v47  ;;  %v816_v51 = vpop.f32.mrb[9].mxu0  ;;  %v944_v52 = vpop.f32.mrb[9].mxu1 }
 0x12c   : > { %v817_v53 = vpop.f32.mrb[10].mxu0  ;;  %v2547_v54 = vpop.f32.mrb[10].mxu1 }
 0x12d   : > { %v1509_v55 = vadd.f32 %v1508_v46, %v1446_v50  ;;  %v1961_v56 = vpack.c.bf16 %v817_v53, %v814_v47  ;;  %v1377_v57 = vadd.f32 %v1376_v49, %v817_v53  ;;  %v1447_v58 = vmul.f32 %v817_v53, %v817_v53  ;;  %v819_v59 = vpop.f32.mrb[11].mxu0  ;;  %v947_v60 = vpop.f32.mrb[11].mxu1 }
 0x12e   : > { %v2041_v61 = vpack.c.bf16 %v2547_v54, %v2545_v48 }
 0x12f   : > { %2109 = vst [vmem:[%s2529_s6 + $0x10] sm:$0xff] %v1961_v56   ;;  %v1510_v62 = vadd.f32 %v1509_v55, %v1447_v58 }
 0x130   : > { %2125 = vst [vmem:[%s2529_s6 + $0x90] sm:$0xff] %v2041_v61  }
 0x132   : > { %v822_v63 = vpop.f32.mrb[12].mxu0  ;;  %v2553_v0 = vpop.f32.mrb[12].mxu1 }
 0x133   : > { %v1378_v1 = vadd.f32 %v1377_v57, %v822_v63  ;;  %v1448_v2 = vmul.f32 %v822_v63, %v822_v63  ;;  %v824_v3 = vpop.f32.mrb[13].mxu0  ;;  %v952_v4 = vpop.f32.mrb[13].mxu1 }
 0x134   : > { %v825_v5 = vpop.f32.mrb[14].mxu0  ;;  %v2555_v6 = vpop.f32.mrb[14].mxu1 }
 0x135   : > { %v1511_v7 = vadd.f32 %v1510_v62, %v1448_v2  ;;  %v1966_v8 = vpack.c.bf16 %v825_v5, %v822_v63  ;;  %v1379_v9 = vadd.f32 %v1378_v1, %v825_v5  ;;  %v1449_v10 = vmul.f32 %v825_v5, %v825_v5  ;;  %v827_v11 = vpop.f32.mrb[15].mxu0  ;;  %v955_v12 = vpop.f32.mrb[15].mxu1 }
 0x136   : > { %v2046_v13 = vpack.c.bf16 %v2555_v6, %v2553_v0 }
 0x137   : > { %2110 = vst [vmem:[%s2529_s6 + $0x18] sm:$0xff] %v1966_v8   ;;  %v1512_v14 = vadd.f32 %v1511_v7, %v1449_v10 }
 0x138   : > { %2126 = vst [vmem:[%s2529_s6 + $0x98] sm:$0xff] %v2046_v13  }
 0x13a   : > { %v830_v15 = vpop.f32.mrb[16].mxu0  ;;  %v2561_v16 = vpop.f32.mrb[16].mxu1 }
 0x13b   : > { %v1380_v17 = vadd.f32 %v1379_v9, %v830_v15  ;;  %v1450_v19 = vmul.f32 %v830_v15, %v830_v15  ;;  %v832_v20 = vpop.f32.mrb[17].mxu0  ;;  %v960_v21 = vpop.f32.mrb[17].mxu1 }
 0x13c   : > { %v833_v22 = vpop.f32.mrb[18].mxu0  ;;  %v2563_v24 = vpop.f32.mrb[18].mxu1 }
 0x13d   : > { %v1513_v25 = vadd.f32 %v1512_v14, %v1450_v19  ;;  %v1971_v26 = vpack.c.bf16 %v833_v22, %v830_v15  ;;  %v1381_v27 = vadd.f32 %v1380_v17, %v833_v22  ;;  %v1451_v28 = vmul.f32 %v833_v22, %v833_v22  ;;  %v835_v29 = vpop.f32.mrb[19].mxu0  ;;  %v963_v30 = vpop.f32.mrb[19].mxu1 }
 0x13e   : > { %v2051_v31 = vpack.c.bf16 %v2563_v24, %v2561_v16 }
 0x13f   : > { %2111 = vst [vmem:[%s2529_s6 + $0x20] sm:$0xff] %v1971_v26   ;;  %v1514_v33 = vadd.f32 %v1513_v25, %v1451_v28 }
 0x140   : > { %2127 = vst [vmem:[%s2529_s6 + $0xa0] sm:$0xff] %v2051_v31  }
 0x142   : > { %v838_v34 = vpop.f32.mrb[20].mxu0  ;;  %v2569_v35 = vpop.f32.mrb[20].mxu1 }
 0x143   : > { %v1382_v36 = vadd.f32 %v1381_v27, %v838_v34  ;;  %v1452_v37 = vmul.f32 %v838_v34, %v838_v34  ;;  %v840_v39 = vpop.f32.mrb[21].mxu0  ;;  %v968_v40 = vpop.f32.mrb[21].mxu1 }
 0x144   : > { %v841_v41 = vpop.f32.mrb[22].mxu0  ;;  %v2571_v42 = vpop.f32.mrb[22].mxu1 }
 0x145   : > { %v1515_v43 = vadd.f32 %v1514_v33, %v1452_v37  ;;  %v1976_v44 = vpack.c.bf16 %v841_v41, %v838_v34  ;;  %v1383_v45 = vadd.f32 %v1382_v36, %v841_v41  ;;  %v1453_v46 = vmul.f32 %v841_v41, %v841_v41  ;;  %v843_v47 = vpop.f32.mrb[23].mxu0  ;;  %v971_v49 = vpop.f32.mrb[23].mxu1 }
 0x146   : > { %v2056_v50 = vpack.c.bf16 %v2571_v42, %v2569_v35 }
 0x147   : > { %2112 = vst [vmem:[%s2529_s6 + $0x28] sm:$0xff] %v1976_v44   ;;  %v1516_v51 = vadd.f32 %v1515_v43, %v1453_v46 }
 0x148   : > { %2128 = vst [vmem:[%s2529_s6 + $0xa8] sm:$0xff] %v2056_v50  }
 0x14a   : > { %v846_v52 = vpop.f32.mrb[24].mxu0  ;;  %v2577_v53 = vpop.f32.mrb[24].mxu1 }
 0x14b   : > { %v1384_v55 = vadd.f32 %v1383_v45, %v846_v52  ;;  %v1454_v56 = vmul.f32 %v846_v52, %v846_v52  ;;  %v848_v57 = vpop.f32.mrb[25].mxu0  ;;  %v976_v58 = vpop.f32.mrb[25].mxu1 }
 0x14c   : > { %v849_v59 = vpop.f32.mrb[26].mxu0  ;;  %v2579_v60 = vpop.f32.mrb[26].mxu1 }
 0x14d   : > { %v1517_v61 = vadd.f32 %v1516_v51, %v1454_v56  ;;  %v1981_v62 = vpack.c.bf16 %v849_v59, %v846_v52  ;;  %v1385_v63 = vadd.f32 %v1384_v55, %v849_v59  ;;  %v1455_v1 = vmul.f32 %v849_v59, %v849_v59  ;;  %v851_v2 = vpop.f32.mrb[27].mxu0  ;;  %v979_v3 = vpop.f32.mrb[27].mxu1 }
 0x14e   : > { %v2061_v4 = vpack.c.bf16 %v2579_v60, %v2577_v53 }
 0x14f   : > { %2113 = vst [vmem:[%s2529_s6 + $0x30] sm:$0xff] %v1981_v62   ;;  %v1518_v5 = vadd.f32 %v1517_v61, %v1455_v1 }
 0x150   : > { %2129 = vst [vmem:[%s2529_s6 + $0xb0] sm:$0xff] %v2061_v4  }
 0x152   : > { %v854_v7 = vpop.f32.mrb[28].mxu0  ;;  %v2585_v8 = vpop.f32.mrb[28].mxu1 }
 0x153   : > { %v1386_v9 = vadd.f32 %v1385_v63, %v854_v7  ;;  %v1456_v10 = vmul.f32 %v854_v7, %v854_v7  ;;  %v856_v11 = vpop.f32.mrb[29].mxu0  ;;  %v984_v12 = vpop.f32.mrb[29].mxu1 }
 0x154   : > { %v857_v13 = vpop.f32.mrb[30].mxu0  ;;  %v2587_v14 = vpop.f32.mrb[30].mxu1 }
 0x155   : > { %v1519_v15 = vadd.f32 %v1518_v5, %v1456_v10  ;;  %v1986_v17 = vpack.c.bf16 %v857_v13, %v854_v7  ;;  %v1387_v19 = vadd.f32 %v1386_v9, %v857_v13  ;;  %v1457_v20 = vmul.f32 %v857_v13, %v857_v13  ;;  %v859_v21 = vpop.f32.mrb[31].mxu0  ;;  %v987_v22 = vpop.f32.mrb[31].mxu1 }
 0x156   : > { %v2066_v25 = vpack.c.bf16 %v2587_v14, %v2585_v8 }
 0x157   : > { %2114 = vst [vmem:[%s2529_s6 + $0x38] sm:$0xff] %v1986_v17   ;;  %v1520_v26 = vadd.f32 %v1519_v15, %v1457_v20 }
 0x158   : > { %2130 = vst [vmem:[%s2529_s6 + $0xb8] sm:$0xff] %v2066_v25  }
 0x15a   : > { %v862_v27 = vpop.f32.mrb[32].mxu0  ;;  %v2593_v28 = vpop.f32.mrb[32].mxu1 }
 0x15b   : > { %v1388_v29 = vadd.f32 %v1387_v19, %v862_v27  ;;  %v1458_v30 = vmul.f32 %v862_v27, %v862_v27  ;;  %v864_v31 = vpop.f32.mrb[33].mxu0  ;;  %v992_v33 = vpop.f32.mrb[33].mxu1 }
 0x15c   : > { %v865_v34 = vpop.f32.mrb[34].mxu0  ;;  %v2595_v36 = vpop.f32.mrb[34].mxu1 }
 0x15d   : > { %v1521_v37 = vadd.f32 %v1520_v26, %v1458_v30  ;;  %v1991_v39 = vpack.c.bf16 %v865_v34, %v862_v27  ;;  %v1389_v40 = vadd.f32 %v1388_v29, %v865_v34  ;;  %v1459_v41 = vmul.f32 %v865_v34, %v865_v34  ;;  %v867_v43 = vpop.f32.mrb[35].mxu0  ;;  %v995_v44 = vpop.f32.mrb[35].mxu1 }
 0x15e   : > { %v2071_v45 = vpack.c.bf16 %v2595_v36, %v2593_v28 }
 0x15f   : > { %2115 = vst [vmem:[%s2529_s6 + $0x40] sm:$0xff] %v1991_v39   ;;  %v1522_v46 = vadd.f32 %v1521_v37, %v1459_v41 }
 0x160   : > { %2131 = vst [vmem:[%s2529_s6 + $0xc0] sm:$0xff] %v2071_v45  }
 0x162   : > { %v870_v47 = vpop.f32.mrb[36].mxu0  ;;  %v2601_v49 = vpop.f32.mrb[36].mxu1 }
 0x163   : > { %v1390_v50 = vadd.f32 %v1389_v40, %v870_v47  ;;  %v1460_v51 = vmul.f32 %v870_v47, %v870_v47  ;;  %v872_v52 = vpop.f32.mrb[37].mxu0  ;;  %v1000_v55 = vpop.f32.mrb[37].mxu1 }
 0x164   : > { %v873_v56 = vpop.f32.mrb[38].mxu0  ;;  %v2603_v57 = vpop.f32.mrb[38].mxu1 }
 0x165   : > { %v1523_v58 = vadd.f32 %v1522_v46, %v1460_v51  ;;  %v1996_v59 = vpack.c.bf16 %v873_v56, %v870_v47  ;;  %v1391_v61 = vadd.f32 %v1390_v50, %v873_v56  ;;  %v1461_v62 = vmul.f32 %v873_v56, %v873_v56  ;;  %v875_v63 = vpop.f32.mrb[39].mxu0  ;;  %v1003_v1 = vpop.f32.mrb[39].mxu1 }
 0x166   : > { %v2076_v2 = vpack.c.bf16 %v2603_v57, %v2601_v49 }
 0x167   : > { %2116 = vst [vmem:[%s2529_s6 + $0x48] sm:$0xff] %v1996_v59   ;;  %v1524_v3 = vadd.f32 %v1523_v58, %v1461_v62 }
 0x168   : > { %2132 = vst [vmem:[%s2529_s6 + $0xc8] sm:$0xff] %v2076_v2  }
 0x16a   : > { %v878_v4 = vpop.f32.mrb[40].mxu0  ;;  %v2609_v5 = vpop.f32.mrb[40].mxu1 }
 0x16b   : > { %v1392_v7 = vadd.f32 %v1391_v61, %v878_v4  ;;  %v1462_v9 = vmul.f32 %v878_v4, %v878_v4  ;;  %v880_v10 = vpop.f32.mrb[41].mxu0  ;;  %v1008_v11 = vpop.f32.mrb[41].mxu1 }
 0x16c   : > { %v881_v12 = vpop.f32.mrb[42].mxu0  ;;  %v2611_v13 = vpop.f32.mrb[42].mxu1 }
 0x16d   : > { %v1525_v15 = vadd.f32 %v1524_v3, %v1462_v9  ;;  %v2001_v17 = vpack.c.bf16 %v881_v12, %v878_v4  ;;  %v1393_v19 = vadd.f32 %v1392_v7, %v881_v12  ;;  %v1463_v20 = vmul.f32 %v881_v12, %v881_v12  ;;  %v883_v21 = vpop.f32.mrb[43].mxu0  ;;  %v1011_v22 = vpop.f32.mrb[43].mxu1 }
 0x16e   : > { %v2081_v25 = vpack.c.bf16 %v2611_v13, %v2609_v5 }
 0x16f   : > { %2117 = vst [vmem:[%s2529_s6 + $0x50] sm:$0xff] %v2001_v17   ;;  %v1526_v26 = vadd.f32 %v1525_v15, %v1463_v20 }
 0x170   : > { %2133 = vst [vmem:[%s2529_s6 + $0xd0] sm:$0xff] %v2081_v25  }
 0x172   : > { %v886_v27 = vpop.f32.mrb[44].mxu0  ;;  %v2617_v29 = vpop.f32.mrb[44].mxu1 }
 0x173   : > { %v1394_v30 = vadd.f32 %v1393_v19, %v886_v27  ;;  %v1464_v31 = vmul.f32 %v886_v27, %v886_v27  ;;  %v888_v33 = vpop.f32.mrb[45].mxu0  ;;  %v1016_v34 = vpop.f32.mrb[45].mxu1 }
 0x174   : > { %v889_v37 = vpop.f32.mrb[46].mxu0  ;;  %v2619_v39 = vpop.f32.mrb[46].mxu1 }
 0x175   : > { %v1527_v40 = vadd.f32 %v1526_v26, %v1464_v31  ;;  %v2006_v41 = vpack.c.bf16 %v889_v37, %v886_v27  ;;  %v1395_v43 = vadd.f32 %v1394_v30, %v889_v37  ;;  %v1465_v44 = vmul.f32 %v889_v37, %v889_v37  ;;  %v891_v45 = vpop.f32.mrb[47].mxu0  ;;  %v1019_v46 = vpop.f32.mrb[47].mxu1 }
 0x176   : > { %v2086_v47 = vpack.c.bf16 %v2619_v39, %v2617_v29 }
 0x177   : > { %2118 = vst [vmem:[%s2529_s6 + $0x58] sm:$0xff] %v2006_v41   ;;  %v1528_v50 = vadd.f32 %v1527_v40, %v1465_v44 }
 0x178   : > { %2134 = vst [vmem:[%s2529_s6 + $0xd8] sm:$0xff] %v2086_v47  }
 0x17a   : > { %v894_v51 = vpop.f32.mrb[48].mxu0  ;;  %v2625_v52 = vpop.f32.mrb[48].mxu1 }
 0x17b   : > { %v1396_v55 = vadd.f32 %v1395_v43, %v894_v51  ;;  %v1466_v56 = vmul.f32 %v894_v51, %v894_v51  ;;  %v896_v58 = vpop.f32.mrb[49].mxu0  ;;  %v1024_v59 = vpop.f32.mrb[49].mxu1 }
 0x17c   : > { %v897_v61 = vpop.f32.mrb[50].mxu0  ;;  %v2627_v62 = vpop.f32.mrb[50].mxu1 }
 0x17d   : > { %v1529_v63 = vadd.f32 %v1528_v50, %v1466_v56  ;;  %v2011_v1 = vpack.c.bf16 %v897_v61, %v894_v51  ;;  %v1397_v2 = vadd.f32 %v1396_v55, %v897_v61  ;;  %v1467_v3 = vmul.f32 %v897_v61, %v897_v61  ;;  %v899_v4 = vpop.f32.mrb[51].mxu0  ;;  %v1027_v7 = vpop.f32.mrb[51].mxu1 }
 0x17e   : > { %v2091_v9 = vpack.c.bf16 %v2627_v62, %v2625_v52 }
 0x17f   : > { %2119 = vst [vmem:[%s2529_s6 + $0x60] sm:$0xff] %v2011_v1   ;;  %v1530_v10 = vadd.f32 %v1529_v63, %v1467_v3 }
 0x180   : > { %2135 = vst [vmem:[%s2529_s6 + $0xe0] sm:$0xff] %v2091_v9  }
 0x182   : > { %v902_v11 = vpop.f32.mrb[52].mxu0  ;;  %v2633_v12 = vpop.f32.mrb[52].mxu1 }
 0x183   : > { %v1398_v15 = vadd.f32 %v1397_v2, %v902_v11  ;;  %v1468_v17 = vmul.f32 %v902_v11, %v902_v11  ;;  %v904_v19 = vpop.f32.mrb[53].mxu0  ;;  %v1032_v20 = vpop.f32.mrb[53].mxu1 }
 0x184   : > { %v905_v21 = vpop.f32.mrb[54].mxu0  ;;  %v2635_v22 = vpop.f32.mrb[54].mxu1 }
 0x185   : > { %v1531_v25 = vadd.f32 %v1530_v10, %v1468_v17  ;;  %v2016_v26 = vpack.c.bf16 %v905_v21, %v902_v11  ;;  %v1399_v27 = vadd.f32 %v1398_v15, %v905_v21  ;;  %v1469_v30 = vmul.f32 %v905_v21, %v905_v21  ;;  %v907_v31 = vpop.f32.mrb[55].mxu0  ;;  %v1035_v33 = vpop.f32.mrb[55].mxu1 }
 0x186   : > { %v2096_v34 = vpack.c.bf16 %v2635_v22, %v2633_v12 }
 0x187   : > { %2120 = vst [vmem:[%s2529_s6 + $0x68] sm:$0xff] %v2016_v26   ;;  %v1532_v37 = vadd.f32 %v1531_v25, %v1469_v30  ;;  %v1474_v30 = vmul.f32 %v2524_v18, %v2524_v18 }
 0x188   : > { %2136 = vst [vmem:[%s2529_s6 + $0xe8] sm:$0xff] %v2096_v34   ;;  %v1475_v34 = vmul.f32 %v2531_v23, %v2531_v23 }
 0x18a   : > { %v910_v40 = vpop.f32.mrb[56].mxu0  ;;  %v2641_v41 = vpop.f32.mrb[56].mxu1 }
 0x18b   : > { %v1400_v43 = vadd.f32 %v1399_v27, %v910_v40  ;;  %v1470_v44 = vmul.f32 %v910_v40, %v910_v40  ;;  %v912_v45 = vpop.f32.mrb[57].mxu0  ;;  %v1040_v46 = vpop.f32.mrb[57].mxu1 }
 0x18c   : > { %v913_v47 = vpop.f32.mrb[58].mxu0  ;;  %v2643_v50 = vpop.f32.mrb[58].mxu1  ;;  %v1477_v46 = vmul.f32 %v2539_v38, %v2539_v38 }
 0x18d   : > { %v1533_v51 = vadd.f32 %v1532_v37, %v1470_v44  ;;  %v2021_v55 = vpack.c.bf16 %v913_v47, %v910_v40  ;;  %v1401_v56 = vadd.f32 %v1400_v43, %v913_v47  ;;  %v1471_v58 = vmul.f32 %v913_v47, %v913_v47  ;;  %v915_v59 = vpop.f32.mrb[59].mxu0  ;;  %v1043_v61 = vpop.f32.mrb[59].mxu1 }
 0x18e   : > { %v2101_v63 = vpack.c.bf16 %v2643_v50, %v2641_v41  ;;  %v1476_v43 = vmul.f32 %v2537_v32, %v2537_v32 }
 0x18f   : > { %2121 = vst [vmem:[%s2529_s6 + $0x70] sm:$0xff] %v2021_v55   ;;  %v1534_v1 = vadd.f32 %v1533_v51, %v1471_v58  ;;  %v1478_v51 = vmul.f32 %v2545_v48, %v2545_v48 }
 0x190   : > { %2137 = vst [vmem:[%s2529_s6 + $0xf0] sm:$0xff] %v2101_v63  }
 0x192   : > { %v918_v2 = vpop.f32.mrb[60].mxu0  ;;  %v2649_v3 = vpop.f32.mrb[60].mxu1 }
 0x193   : > { %v1402_v4 = vadd.f32 %v1401_v56, %v918_v2  ;;  %v1472_v7 = vmul.f32 %v918_v2, %v918_v2  ;;  %v920_v9 = vpop.f32.mrb[61].mxu0  ;;  %v1048_v10 = vpop.f32.mrb[61].mxu1 }
 0x194   : > { %v921_v11 = vpop.f32.mrb[62].mxu0  ;;  %v2651_v15 = vpop.f32.mrb[62].mxu1 }
 0x195   : > { %v1535_v17 = vadd.f32 %v1534_v1, %v1472_v7  ;;  %v2026_v19 = vpack.c.bf16 %v921_v11, %v918_v2  ;;  %v1403_v20 = vadd.f32 %v1402_v4, %v921_v11  ;;  %v1473_v21 = vmul.f32 %v921_v11, %v921_v11  ;;  %v923_v25 = vpop.f32.mrb[63].mxu0  ;;  %v1051_v26 = vpop.f32.mrb[63].mxu1 }
 0x196   : > { %v2106_v27 = vpack.c.bf16 %v2651_v15, %v2649_v3 }
 0x197   : > { %2122 = vst [vmem:[%s2529_s6 + $0x78] sm:$0xff] %v2026_v19   ;;  %v1404_v31 = vadd.f32 %v1403_v20, %v2524_v18  ;;  %v1536_v33 = vadd.f32 %v1535_v17, %v1473_v21 }
 0x198   : > { %2138 = vst [vmem:[%s2529_s6 + $0xf8] sm:$0xff] %v2106_v27  }
 0x199   : > { %v1405_v37 = vadd.f32 %v1404_v31, %v2531_v23  ;;  %v1537_v40 = vadd.f32 %v1536_v33, %v1474_v30  ;;  %v1479_v23 = vmul.f32 %v2547_v54, %v2547_v54 }
 0x19b   : > { %v1406_v44 = vadd.f32 %v1405_v37, %v2537_v32  ;;  %v1538_v45 = vadd.f32 %v1537_v40, %v1475_v34  ;;  %v1480_v32 = vmul.f32 %v2553_v0, %v2553_v0  ;;  %v1490_v37 = vmul.f32 %v2593_v28, %v2593_v28 }
 0x19d   : > { %v1407_v47 = vadd.f32 %v1406_v44, %v2539_v38  ;;  %v1539_v18 = vadd.f32 %v1538_v45, %v1476_v43  ;;  %v1481_v38 = vmul.f32 %v2555_v6, %v2555_v6  ;;  %v1491_v44 = vmul.f32 %v2595_v36, %v2595_v36 }
 0x19f   : > { %v1408_v55 = vadd.f32 %v1407_v47, %v2545_v48  ;;  %v1540_v56 = vadd.f32 %v1539_v18, %v1477_v46  ;;  %v1482_v48 = vmul.f32 %v2561_v16, %v2561_v16  ;;  %v1492_v46 = vmul.f32 %v2601_v49, %v2601_v49 }
 0x1a0   : > { %v1493_v18 = vmul.f32 %v2603_v57, %v2603_v57 }
 0x1a1   : > { %v1409_v58 = vadd.f32 %v1408_v55, %v2547_v54  ;;  %v1541_v59 = vadd.f32 %v1540_v56, %v1478_v51  ;;  %v1483_v54 = vmul.f32 %v2563_v24, %v2563_v24  ;;  %v1494_v55 = vmul.f32 %v2609_v5, %v2609_v5 }
 0x1a3   : > { %v1410_v61 = vadd.f32 %v1409_v58, %v2553_v0  ;;  %v1542_v63 = vadd.f32 %v1541_v59, %v1479_v23  ;;  %v1484_v0 = vmul.f32 %v2569_v35, %v2569_v35  ;;  %v1495_v23 = vmul.f32 %v2611_v13, %v2611_v13 }
 0x1a4   : > { %v1496_v59 = vmul.f32 %v2617_v29, %v2617_v29 }
 0x1a5   : > { %v1411_v1 = vadd.f32 %v1410_v61, %v2555_v6  ;;  %v1543_v2 = vadd.f32 %v1542_v63, %v1480_v32  ;;  %v1485_v6 = vmul.f32 %v2571_v42, %v2571_v42  ;;  %v1497_v61 = vmul.f32 %v2619_v39, %v2619_v39 }
 0x1a7   : > { %v1544_v4 = vadd.f32 %v1543_v2, %v1481_v38  ;;  %v1412_v7 = vadd.f32 %v1411_v1, %v2561_v16  ;;  %v1486_v16 = vmul.f32 %v2577_v53, %v2577_v53  ;;  %v1498_v38 = vmul.f32 %v2625_v52, %v2625_v52 }
 0x1a8   : > { %v1499_v2 = vmul.f32 %v2627_v62, %v2627_v62 }
 0x1a9   : > { %v1413_v9 = vadd.f32 %v1412_v7, %v2563_v24  ;;  %v1545_v10 = vadd.f32 %v1544_v4, %v1482_v48  ;;  %v1487_v24 = vmul.f32 %v2579_v60, %v2579_v60  ;;  %v1500_v4 = vmul.f32 %v2633_v12, %v2633_v12 }
 0x1ab   : > { %v1414_v11 = vadd.f32 %v1413_v9, %v2569_v35  ;;  %v1546_v17 = vadd.f32 %v1545_v10, %v1483_v54  ;;  %v1488_v35 = vmul.f32 %v2585_v8, %v2585_v8  ;;  %v1501_v54 = vmul.f32 %v2635_v22, %v2635_v22 }
 0x1ac   : > { %v1502_v10 = vmul.f32 %v2641_v41, %v2641_v41 }
 0x1ad   : > { %v1415_v19 = vadd.f32 %v1414_v11, %v2571_v42  ;;  %v1547_v20 = vadd.f32 %v1546_v17, %v1484_v0  ;;  %v1489_v42 = vmul.f32 %v2587_v14, %v2587_v14  ;;  %v1503_v11 = vmul.f32 %v2643_v50, %v2643_v50 }
 0x1af   : > { %v1416_v21 = vadd.f32 %v1415_v19, %v2577_v53  ;;  %v1548_v25 = vadd.f32 %v1547_v20, %v1485_v6  ;;  %v1505_v20 = vmul.f32 %v2651_v15, %v2651_v15 }
 0x1b1   : > { %v1417_v26 = vadd.f32 %v1416_v21, %v2579_v60  ;;  %v1549_v27 = vadd.f32 %v1548_v25, %v1486_v16 }
 0x1b3   : > { %v1418_v30 = vadd.f32 %v1417_v26, %v2585_v8  ;;  %v1550_v31 = vadd.f32 %v1549_v27, %v1487_v24 }
 0x1b5   : > { %v1419_v33 = vadd.f32 %v1418_v30, %v2587_v14  ;;  %v1551_v34 = vadd.f32 %v1550_v31, %v1488_v35 }
 0x1b7   : > { %v1420_v53 = vadd.f32 %v1419_v33, %v2593_v28  ;;  %v1552_v40 = vadd.f32 %v1551_v34, %v1489_v42 }
 0x1b9   : > { %v1553_v60 = vadd.f32 %v1552_v40, %v1490_v37  ;;  %v1421_v43 = vadd.f32 %v1420_v53, %v2595_v36 }
 0x1bb   : > { %v1554_v8 = vadd.f32 %v1553_v60, %v1491_v44  ;;  %v1422_v45 = vadd.f32 %v1421_v43, %v2601_v49 }
 0x1bd   : > { %v1555_v14 = vadd.f32 %v1554_v8, %v1492_v46  ;;  %v1423_v47 = vadd.f32 %v1422_v45, %v2603_v57 }
 0x1bf   : > { %v1556_v28 = vadd.f32 %v1555_v14, %v1493_v18  ;;  %v1424_v51 = vadd.f32 %v1423_v47, %v2609_v5 }
 0x1c1   : > { %v1557_v56 = vadd.f32 %v1556_v28, %v1494_v55  ;;  %v1425_v36 = vadd.f32 %v1424_v51, %v2611_v13 }
 0x1c3   : > { %v1558_v58 = vadd.f32 %v1557_v56, %v1495_v23  ;;  %v1426_v49 = vadd.f32 %v1425_v36, %v2617_v29 }
 0x1c5   : > { %v1559_v32 = vadd.f32 %v1558_v58, %v1496_v59  ;;  %v1427_v57 = vadd.f32 %v1426_v49, %v2619_v39 }
 0x1c7   : > { %v1560_v63 = vadd.f32 %v1559_v32, %v1497_v61  ;;  %v1428_v5 = vadd.f32 %v1427_v57, %v2625_v52 }
 0x1c9   : > { %v1561_v1 = vadd.f32 %v1560_v63, %v1498_v38  ;;  %v1429_v13 = vadd.f32 %v1428_v5, %v2627_v62 }
 0x1cb   : > { %v1562_v48 = vadd.f32 %v1561_v1, %v1499_v2  ;;  %v1430_v29 = vadd.f32 %v1429_v13, %v2633_v12  ;;  %v1504_v12 = vmul.f32 %v2649_v3, %v2649_v3 }
 0x1cd   : > { %v1563_v7 = vadd.f32 %v1562_v48, %v1500_v4  ;;  %v1431_v39 = vadd.f32 %v1430_v29, %v2635_v22 }
 0x1cf   : > { %v1564_v9 = vadd.f32 %v1563_v7, %v1501_v54  ;;  %v1432_v52 = vadd.f32 %v1431_v39, %v2641_v41 }
 0x1d1   : > { %v1565_v0 = vadd.f32 %v1564_v9, %v1502_v10  ;;  %v1433_v62 = vadd.f32 %v1432_v52, %v2643_v50 }
 0x1d3   : > { %v1566_v17 = vadd.f32 %v1565_v0, %v1503_v11  ;;  %v1434_v6 = vadd.f32 %v1433_v62, %v2649_v3 }
 0x1d5   : > { %v1567_v22 = vadd.f32 %v1566_v17, %v1504_v12  ;;  %v1435_v19 = vadd.f32 %v1434_v6, %v2651_v15 }
 0x1d7   : > { %v1436_v41 = vrot.slane %v1435_v19, 4  ;;  %v1568_v16 = vadd.f32 %v1567_v22, %v1505_v20 }
 0x1d9   : > { %v1437_v21 = vadd.f32 %v1436_v41, %v1435_v19  ;;  %v1569_v25 = vrot.slane %v1568_v16, 4 }
 0x1db   : > { %v1438_v24 = vrot.slane %v1437_v21, 2  ;;  %v1570_v26 = vadd.f32 %v1569_v25, %v1568_v16 }
 0x1dd   : > { %v1439_v50 = vadd.f32 %v1438_v24, %v1437_v21  ;;  %v1571_v27 = vrot.slane %v1570_v26, 2 }
 0x1df   : > { %v1440_v35 = vrot.slane %v1439_v50, 1  ;;  %v1572_v30 = vadd.f32 %v1571_v27, %v1570_v26 }
 0x1e1   : > { %v1573_v31 = vrot.slane %v1572_v30, 1  ;;  %v1441_v3 = vadd.f32 %v1440_v35, %v1439_v50 }
 0x1e3   : > { %v1574_v42 = vadd.f32 %v1573_v31, %v1572_v30 }
 0x1e5   : > { %v1576_v15 = vsel %vm1575_vm0, %v1441_v3, %v1574_v42 }
 0x1e6   : > { %1581 = vst [vmem:[%s250_s9] sm:$0x3] %v1576_v15 }
 0x1e7 PF: > { %s14_s14 = sadd.s32 1, %s2330_s14   ;;  %s2770_s12 = smov %s2326_s13 }
 0x1e8   : > { %p11_p5 = scmp.ge.s32.totalorder %s14_s14, 4   ;;  %s2771_s13 = smov %s2773_s15 }
 0x1ea   :  { %13 = sbr.rel (!%p11_p5) target bundleno = 2 (0x2), region = 78 }

// kernel: _lambda_.5
= control target key start
LH: loop header
LB: loop body
LE: loop exit
PB: predicated region body
PF: predicated region fallthrough
CT: control target
= control target key end

     0   :  { %s1558_s12 = smov 0   ;;  %s1560_s13 = smov 0   ;;  %s1806_s0 = inlined_call_operand.vmem [shape: bf16[2,512,128], index: 0, kind: input, shape index: {}]   ;;  %s1807_s1 = inlined_call_operand.vmem [shape: f32[2,1,128], index: 1, kind: input, shape index: {}]   ;;  %s1808_s2 = inlined_call_operand.vmem [shape: f32[2,1,128], index: 2, kind: input, shape index: {}]   ;;  %s1809_s3 = inlined_call_operand.vmem [shape: bf16[2,512,128], index: 3, kind: output, shape index: {}]  }
   0x1   :  { %s1562_s14 = smov 0  }
   0x2 LB: > { %s25_s15 = sadd.s32 1, %s1532_s13  ;;  %p1001_p0 = scmp.ge.s32.totalorder %s1536_s14, 1  ;;  %s1536_s14 = sphi %s1562_s14, %s13_s14   ;;  %s1532_s13 = sphi %s1560_s13, %s1811_s13   ;;  %s1528_s12 = sphi %s1558_s12, %s1810_s12  }
   0x3   : > { %p27_p1 = scmp.ge.s32.totalorder %s25_s15, 2  ;;  %p174_p2 = scmp.lt.s32.totalorder %s1536_s14, 3 }
   0x5   : > { %s1813_s15 = smov (%p27_p1, %s25_s15), 0  ;;  %p175_p3 = pnand %p1001_p0, %p174_p2 }
   0x6   : > { %p213_p4 = scmp.lt.s32.totalorder (!%p175_p3), %s1528_s12, 1 }
   0x7   : > { %178 = sbr.rel (%p175_p3) target bundleno = 96 (0x60), region = 32 }
   0xe   : > { %s1815_s12 = smov (!%p213_p4, %s1528_s12), 1 }
   0xf   : > { %s1074_s16 = sshll.u32 %s1815_s12, 8  ;;  %s224_s19 = scalar_lea.vmem %s1807_s1, %s1815_s12 }
  0x10   : > { %s1588_s22 = scalar_lea.vmem %s1806_s0, %s1074_s16  ;;  %s227_s25 = scalar_lea.vmem %s1808_s2, %s1815_s12  ;;  %v1595_v1 = vld [vmem:[%s224_s19] ss:$0 sm:$0xff] }
  0x11   : > { %v1141_v0 = vld [vmem:[%s1588_s22] sm:$0xff]   ;;  %v1428_v2 = vld [vmem:[%s1588_s22 + $0x8] sm:$0xff]   ;;  %v1429_v7 = vld [vmem:[%s1588_s22 + $0x10] sm:$0xff]   ;;  %s1625_s28 = scalar_lea.vmem %s1809_s3, %s1074_s16 }
  0x12   : > { %v1142_v3 = vunpack.c.l.bf16 %v1141_v0  ;;  %v1143_v4 = vunpack.c.h.bf16 %v1141_v0  ;;  %v1146_v5 = vunpack.c.l.bf16 %v1428_v2  ;;  %v1147_v6 = vunpack.c.h.bf16 %v1428_v2  ;;  %v1430_v8 = vld [vmem:[%s1588_s22 + $0x18] sm:$0xff]   ;;  %v1600_v9 = vld [vmem:[%s227_s25] ss:$0 sm:$0xff]  ;;  %v1432_v35 = vld [vmem:[%s1588_s22 + $0x28] sm:$0xff]  }
  0x13   : > { %v1150_v10 = vunpack.c.l.bf16 %v1429_v7  ;;  %v1151_v11 = vunpack.c.h.bf16 %v1429_v7  ;;  %v1154_v12 = vunpack.c.l.bf16 %v1430_v8  ;;  %v1155_v13 = vunpack.c.h.bf16 %v1430_v8  ;;  %v1431_v30 = vld [vmem:[%s1588_s22 + $0x20] sm:$0xff]   ;;  %v1433_v40 = vld [vmem:[%s1588_s22 + $0x30] sm:$0xff]   ;;  %v1434_v45 = vld [vmem:[%s1588_s22 + $0x38] sm:$0xff]  }
  0x14   : > { %v373_v14 = vmul.f32 %v1142_v3, %v1595_v1  ;;  %v374_v15 = vmul.f32 %v1143_v4, %v1595_v1  ;;  %v375_v16 = vmul.f32 %v1146_v5, %v1595_v1  ;;  %v376_v17 = vmul.f32 %v1147_v6, %v1595_v1  ;;  %v1435_v3 = vld [vmem:[%s1588_s22 + $0x40] sm:$0xff]  }
  0x15   : > { %v377_v18 = vmul.f32 %v1150_v10, %v1595_v1  ;;  %v378_v19 = vmul.f32 %v1151_v11, %v1595_v1  ;;  %v379_v20 = vmul.f32 %v1154_v12, %v1595_v1  ;;  %v380_v21 = vmul.f32 %v1155_v13, %v1595_v1  ;;  %v1436_v13 = vld [vmem:[%s1588_s22 + $0x48] sm:$0xff]  }
  0x16   : > { %v444_v22 = vsub.f32 %v373_v14, %v1600_v9  ;;  %v445_v23 = vsub.f32 %v374_v15, %v1600_v9  ;;  %v446_v24 = vsub.f32 %v375_v16, %v1600_v9  ;;  %v447_v25 = vsub.f32 %v376_v17, %v1600_v9 }
  0x17   : > { %v448_v26 = vsub.f32 %v377_v18, %v1600_v9  ;;  %v449_v27 = vsub.f32 %v378_v19, %v1600_v9  ;;  %v450_v28 = vsub.f32 %v379_v20, %v1600_v9  ;;  %v451_v29 = vsub.f32 %v380_v21, %v1600_v9  ;;  %v1437_v18 = vld [vmem:[%s1588_s22 + $0x50] sm:$0xff]  }
  0x18   : > { %v508_v31 = vmax.f32 %v444_v22, 0.0  ;;  %v509_v32 = vmax.f32 %v445_v23, 0.0  ;;  %v510_v33 = vmax.f32 %v446_v24, 0.0  ;;  %v511_v34 = vmax.f32 %v447_v25, 0.0  ;;  %v1438_v23 = vld [vmem:[%s1588_s22 + $0x58] sm:$0xff]  }
  0x19   : > { %v512_v36 = vmax.f32 %v448_v26, 0.0  ;;  %v513_v37 = vmax.f32 %v449_v27, 0.0  ;;  %v514_v38 = vmax.f32 %v450_v28, 0.0  ;;  %v515_v39 = vmax.f32 %v451_v29, 0.0 }
  0x1a   : > { %v1271_v41 = vpack.c.bf16 %v509_v32, %v508_v31  ;;  %v1276_v42 = vpack.c.bf16 %v511_v34, %v510_v33  ;;  %v1158_v43 = vunpack.c.l.bf16 %v1431_v30  ;;  %v1159_v44 = vunpack.c.h.bf16 %v1431_v30 }
  0x1b   : > { %v1281_v46 = vpack.c.bf16 %v513_v37, %v512_v36  ;;  %v1286_v47 = vpack.c.bf16 %v515_v39, %v514_v38  ;;  %v1162_v48 = vunpack.c.l.bf16 %v1432_v35  ;;  %v1163_v49 = vunpack.c.h.bf16 %v1432_v35 }
  0x1c   : > { %1272 = vst [vmem:[%s1625_s28] sm:$0xff] %v1271_v41   ;;  %1459 = vst [vmem:[%s1625_s28 + $0x8] sm:$0xff] %v1276_v42   ;;  %v381_v50 = vmul.f32 %v1158_v43, %v1595_v1  ;;  %v382_v51 = vmul.f32 %v1159_v44, %v1595_v1  ;;  %v1166_v52 = vunpack.c.l.bf16 %v1433_v40  ;;  %v1167_v53 = vunpack.c.h.bf16 %v1433_v40  ;;  %v1439_v40 = vld [vmem:[%s1588_s22 + $0x60] sm:$0xff]  }
  0x1d   : > { %1460 = vst [vmem:[%s1625_s28 + $0x10] sm:$0xff] %v1281_v46   ;;  %1461 = vst [vmem:[%s1625_s28 + $0x18] sm:$0xff] %v1286_v47   ;;  %v383_v54 = vmul.f32 %v1162_v48, %v1595_v1  ;;  %v384_v55 = vmul.f32 %v1163_v49, %v1595_v1  ;;  %v1170_v56 = vunpack.c.l.bf16 %v1434_v45  ;;  %v1171_v57 = vunpack.c.h.bf16 %v1434_v45 }
  0x1e   : > { %v452_v58 = vsub.f32 %v381_v50, %v1600_v9  ;;  %v453_v59 = vsub.f32 %v382_v51, %v1600_v9  ;;  %v385_v60 = vmul.f32 %v1166_v52, %v1595_v1  ;;  %v386_v61 = vmul.f32 %v1167_v53, %v1595_v1  ;;  %v1440_v53 = vld [vmem:[%s1588_s22 + $0x68] sm:$0xff]  }
  0x1f   : > { %v454_v62 = vsub.f32 %v383_v54, %v1600_v9  ;;  %v455_v63 = vsub.f32 %v384_v55, %v1600_v9  ;;  %v387_v0 = vmul.f32 %v1170_v56, %v1595_v1  ;;  %v388_v2 = vmul.f32 %v1171_v57, %v1595_v1 }
  0x20   : > { %v516_v4 = vmax.f32 %v452_v58, 0.0  ;;  %v517_v5 = vmax.f32 %v453_v59, 0.0  ;;  %v456_v6 = vsub.f32 %v385_v60, %v1600_v9  ;;  %v457_v7 = vsub.f32 %v386_v61, %v1600_v9  ;;  %v1441_v58 = vld [vmem:[%s1588_s22 + $0x70] sm:$0xff]  }
  0x21   : > { %v518_v8 = vmax.f32 %v454_v62, 0.0  ;;  %v519_v10 = vmax.f32 %v455_v63, 0.0  ;;  %v458_v11 = vsub.f32 %v387_v0, %v1600_v9  ;;  %v459_v12 = vsub.f32 %v388_v2, %v1600_v9  ;;  %v1442_v63 = vld [vmem:[%s1588_s22 + $0x78] sm:$0xff]  }
  0x22   : > { %v1291_v14 = vpack.c.bf16 %v517_v5, %v516_v4  ;;  %v520_v15 = vmax.f32 %v456_v6, 0.0  ;;  %v521_v16 = vmax.f32 %v457_v7, 0.0  ;;  %v1174_v17 = vunpack.c.l.bf16 %v1435_v3 }
  0x23   : > { %v1296_v19 = vpack.c.bf16 %v519_v10, %v518_v8  ;;  %v522_v20 = vmax.f32 %v458_v11, 0.0  ;;  %v523_v21 = vmax.f32 %v459_v12, 0.0  ;;  %v1175_v22 = vunpack.c.h.bf16 %v1435_v3 }
  0x24   : > { %1462 = vst [vmem:[%s1625_s28 + $0x20] sm:$0xff] %v1291_v14   ;;  %v1301_v24 = vpack.c.bf16 %v521_v16, %v520_v15  ;;  %v389_v25 = vmul.f32 %v1174_v17, %v1595_v1  ;;  %v1178_v26 = vunpack.c.l.bf16 %v1436_v13  ;;  %v1179_v27 = vunpack.c.h.bf16 %v1436_v13  ;;  %v1443_v14 = vld [vmem:[%s1588_s22 + $0x80] sm:$0xff]  }
  0x25   : > { %1463 = vst [vmem:[%s1625_s28 + $0x28] sm:$0xff] %v1296_v19   ;;  %v1306_v28 = vpack.c.bf16 %v523_v21, %v522_v20  ;;  %v390_v29 = vmul.f32 %v1175_v22, %v1595_v1  ;;  %v1182_v30 = vunpack.c.l.bf16 %v1437_v18  ;;  %v1183_v31 = vunpack.c.h.bf16 %v1437_v18 }
  0x26   : > { %1464 = vst [vmem:[%s1625_s28 + $0x30] sm:$0xff] %v1301_v24   ;;  %v460_v32 = vsub.f32 %v389_v25, %v1600_v9  ;;  %v391_v33 = vmul.f32 %v1178_v26, %v1595_v1  ;;  %v392_v34 = vmul.f32 %v1179_v27, %v1595_v1  ;;  %v1186_v35 = vunpack.c.l.bf16 %v1438_v23 }
  0x27   : > { %1465 = vst [vmem:[%s1625_s28 + $0x38] sm:$0xff] %v1306_v28   ;;  %v461_v36 = vsub.f32 %v390_v29, %v1600_v9  ;;  %v393_v37 = vmul.f32 %v1182_v30, %v1595_v1  ;;  %v394_v38 = vmul.f32 %v1183_v31, %v1595_v1  ;;  %v1187_v39 = vunpack.c.h.bf16 %v1438_v23  ;;  %v1444_v31 = vld [vmem:[%s1588_s22 + $0x88] sm:$0xff]  }
  0x28   : > { %v524_v41 = vmax.f32 %v460_v32, 0.0  ;;  %v462_v42 = vsub.f32 %v391_v33, %v1600_v9  ;;  %v463_v43 = vsub.f32 %v392_v34, %v1600_v9  ;;  %v395_v44 = vmul.f32 %v1186_v35, %v1595_v1 }
  0x29   : > { %v525_v45 = vmax.f32 %v461_v36, 0.0  ;;  %v464_v46 = vsub.f32 %v393_v37, %v1600_v9  ;;  %v465_v47 = vsub.f32 %v394_v38, %v1600_v9  ;;  %v396_v48 = vmul.f32 %v1187_v39, %v1595_v1  ;;  %v1445_v36 = vld [vmem:[%s1588_s22 + $0x90] sm:$0xff]  }
  0x2a   : > { %v526_v49 = vmax.f32 %v462_v42, 0.0  ;;  %v527_v50 = vmax.f32 %v463_v43, 0.0  ;;  %v466_v51 = vsub.f32 %v395_v44, %v1600_v9  ;;  %v1190_v52 = vunpack.c.l.bf16 %v1439_v40 }
  0x2b   : > { %v1311_v54 = vpack.c.bf16 %v525_v45, %v524_v41  ;;  %v528_v55 = vmax.f32 %v464_v46, 0.0  ;;  %v529_v56 = vmax.f32 %v465_v47, 0.0  ;;  %v467_v57 = vsub.f32 %v396_v48, %v1600_v9  ;;  %v1446_v41 = vld [vmem:[%s1588_s22 + $0x98] sm:$0xff]  }
  0x2c   : > { %v1316_v59 = vpack.c.bf16 %v527_v50, %v526_v49  ;;  %v530_v60 = vmax.f32 %v466_v51, 0.0  ;;  %v1191_v61 = vunpack.c.h.bf16 %v1439_v40  ;;  %v397_v62 = vmul.f32 %v1190_v52, %v1595_v1 }
  0x2d   : > { %1466 = vst [vmem:[%s1625_s28 + $0x40] sm:$0xff] %v1311_v54   ;;  %v1321_v0 = vpack.c.bf16 %v529_v56, %v528_v55  ;;  %v531_v2 = vmax.f32 %v467_v57, 0.0  ;;  %v1194_v3 = vunpack.c.l.bf16 %v1440_v53  ;;  %v1195_v4 = vunpack.c.h.bf16 %v1440_v53  ;;  %v1447_v54 = vld [vmem:[%s1588_s22 + $0xa0] sm:$0xff]  }
  0x2e   : > { %1467 = vst [vmem:[%s1625_s28 + $0x48] sm:$0xff] %v1316_v59   ;;  %v398_v5 = vmul.f32 %v1191_v61, %v1595_v1  ;;  %v468_v6 = vsub.f32 %v397_v62, %v1600_v9  ;;  %v1198_v7 = vunpack.c.l.bf16 %v1441_v58  ;;  %v1199_v8 = vunpack.c.h.bf16 %v1441_v58 }
  0x2f   : > { %1468 = vst [vmem:[%s1625_s28 + $0x50] sm:$0xff] %v1321_v0   ;;  %v1326_v10 = vpack.c.bf16 %v531_v2, %v530_v60  ;;  %v399_v11 = vmul.f32 %v1194_v3, %v1595_v1  ;;  %v400_v12 = vmul.f32 %v1195_v4, %v1595_v1  ;;  %v1202_v13 = vunpack.c.l.bf16 %v1442_v63  ;;  %v1448_v4 = vld [vmem:[%s1588_s22 + $0xa8] sm:$0xff]  }
  0x30   : > { %v469_v15 = vsub.f32 %v398_v5, %v1600_v9  ;;  %v532_v16 = vmax.f32 %v468_v6, 0.0  ;;  %v401_v17 = vmul.f32 %v1198_v7, %v1595_v1  ;;  %v402_v18 = vmul.f32 %v1199_v8, %v1595_v1 }
  0x31   : > { %1469 = vst [vmem:[%s1625_s28 + $0x58] sm:$0xff] %v1326_v10   ;;  %v470_v19 = vsub.f32 %v399_v11, %v1600_v9  ;;  %v471_v20 = vsub.f32 %v400_v12, %v1600_v9  ;;  %v1203_v21 = vunpack.c.h.bf16 %v1442_v63  ;;  %v403_v22 = vmul.f32 %v1202_v13, %v1595_v1 }
  0x32   : > { %v533_v23 = vmax.f32 %v469_v15, 0.0  ;;  %v472_v24 = vsub.f32 %v401_v17, %v1600_v9  ;;  %v473_v25 = vsub.f32 %v402_v18, %v1600_v9  ;;  %v1206_v26 = vunpack.c.l.bf16 %v1443_v14 }
  0x33   : > { %v534_v27 = vmax.f32 %v470_v19, 0.0  ;;  %v535_v28 = vmax.f32 %v471_v20, 0.0  ;;  %v404_v29 = vmul.f32 %v1203_v21, %v1595_v1  ;;  %v474_v30 = vsub.f32 %v403_v22, %v1600_v9  ;;  %v1450_v19 = vld [vmem:[%s1588_s22 + $0xb8] sm:$0xff]  }
  0x34   : > { %v1331_v32 = vpack.c.bf16 %v533_v23, %v532_v16  ;;  %v536_v33 = vmax.f32 %v472_v24, 0.0  ;;  %v537_v34 = vmax.f32 %v473_v25, 0.0  ;;  %v1207_v35 = vunpack.c.h.bf16 %v1443_v14  ;;  %v1449_v14 = vld [vmem:[%s1588_s22 + $0xb0] sm:$0xff]  }
  0x35   : > { %v1336_v37 = vpack.c.bf16 %v535_v28, %v534_v27  ;;  %v475_v38 = vsub.f32 %v404_v29, %v1600_v9  ;;  %v538_v39 = vmax.f32 %v474_v30, 0.0  ;;  %v405_v40 = vmul.f32 %v1206_v26, %v1595_v1 }
  0x36   : > { %1470 = vst [vmem:[%s1625_s28 + $0x60] sm:$0xff] %v1331_v32   ;;  %v1341_v42 = vpack.c.bf16 %v537_v34, %v536_v33  ;;  %v406_v43 = vmul.f32 %v1207_v35, %v1595_v1  ;;  %v1210_v44 = vunpack.c.l.bf16 %v1444_v31  ;;  %v1211_v45 = vunpack.c.h.bf16 %v1444_v31  ;;  %v1451_v32 = vld [vmem:[%s1588_s22 + $0xc0] sm:$0xff]  }
  0x37   : > { %1471 = vst [vmem:[%s1625_s28 + $0x68] sm:$0xff] %v1336_v37   ;;  %v539_v46 = vmax.f32 %v475_v38, 0.0  ;;  %v476_v47 = vsub.f32 %v405_v40, %v1600_v9  ;;  %v1214_v48 = vunpack.c.l.bf16 %v1445_v36  ;;  %v1215_v49 = vunpack.c.h.bf16 %v1445_v36 }
  0x38   : > { %1472 = vst [vmem:[%s1625_s28 + $0x70] sm:$0xff] %v1341_v42   ;;  %v477_v50 = vsub.f32 %v406_v43, %v1600_v9  ;;  %v407_v51 = vmul.f32 %v1210_v44, %v1595_v1  ;;  %v408_v52 = vmul.f32 %v1211_v45, %v1595_v1  ;;  %v1218_v53 = vunpack.c.l.bf16 %v1446_v41  ;;  %v1452_v45 = vld [vmem:[%s1588_s22 + $0xc8] sm:$0xff]  }
  0x39   : > { %v1346_v55 = vpack.c.bf16 %v539_v46, %v538_v39  ;;  %v540_v56 = vmax.f32 %v476_v47, 0.0  ;;  %v409_v57 = vmul.f32 %v1214_v48, %v1595_v1  ;;  %v410_v58 = vmul.f32 %v1215_v49, %v1595_v1 }
  0x3a   : > { %v541_v59 = vmax.f32 %v477_v50, 0.0  ;;  %v478_v60 = vsub.f32 %v407_v51, %v1600_v9  ;;  %v479_v61 = vsub.f32 %v408_v52, %v1600_v9  ;;  %v1219_v62 = vunpack.c.h.bf16 %v1446_v41 }
  0x3b   : > { %1473 = vst [vmem:[%s1625_s28 + $0x78] sm:$0xff] %v1346_v55   ;;  %v480_v63 = vsub.f32 %v409_v57, %v1600_v9  ;;  %v481_v0 = vsub.f32 %v410_v58, %v1600_v9  ;;  %v411_v2 = vmul.f32 %v1218_v53, %v1595_v1  ;;  %v1222_v3 = vunpack.c.l.bf16 %v1447_v54 }
  0x3c   : > { %v1351_v5 = vpack.c.bf16 %v541_v59, %v540_v56  ;;  %v542_v6 = vmax.f32 %v478_v60, 0.0  ;;  %v543_v7 = vmax.f32 %v479_v61, 0.0  ;;  %v412_v8 = vmul.f32 %v1219_v62, %v1595_v1 }
  0x3d   : > { %v544_v10 = vmax.f32 %v480_v63, 0.0  ;;  %v545_v11 = vmax.f32 %v481_v0, 0.0  ;;  %v482_v12 = vsub.f32 %v411_v2, %v1600_v9  ;;  %v1223_v13 = vunpack.c.h.bf16 %v1447_v54  ;;  %v1453_v54 = vld [vmem:[%s1588_s22 + $0xd0] sm:$0xff]   ;;  %v1454_v63 = vld [vmem:[%s1588_s22 + $0xd8] sm:$0xff]  }
  0x3e   : > { %1474 = vst [vmem:[%s1625_s28 + $0x80] sm:$0xff] %v1351_v5   ;;  %v1356_v15 = vpack.c.bf16 %v543_v7, %v542_v6  ;;  %v483_v16 = vsub.f32 %v412_v8, %v1600_v9  ;;  %v413_v17 = vmul.f32 %v1222_v3, %v1595_v1  ;;  %v1226_v18 = vunpack.c.l.bf16 %v1448_v4 }
  0x3f   : > { %v1361_v20 = vpack.c.bf16 %v545_v11, %v544_v10  ;;  %v546_v21 = vmax.f32 %v482_v12, 0.0  ;;  %v414_v22 = vmul.f32 %v1223_v13, %v1595_v1  ;;  %v1227_v23 = vunpack.c.h.bf16 %v1448_v4  ;;  %v1455_v10 = vld [vmem:[%s1588_s22 + $0xe0] sm:$0xff]  }
  0x40   : > { %1475 = vst [vmem:[%s1625_s28 + $0x88] sm:$0xff] %v1356_v15   ;;  %v547_v24 = vmax.f32 %v483_v16, 0.0  ;;  %v484_v25 = vsub.f32 %v413_v17, %v1600_v9  ;;  %v415_v26 = vmul.f32 %v1226_v18, %v1595_v1  ;;  %v1230_v27 = vunpack.c.l.bf16 %v1449_v14 }
  0x41   : > { %1476 = vst [vmem:[%s1625_s28 + $0x90] sm:$0xff] %v1361_v20   ;;  %v485_v28 = vsub.f32 %v414_v22, %v1600_v9  ;;  %v416_v29 = vmul.f32 %v1227_v23, %v1595_v1  ;;  %v1231_v30 = vunpack.c.h.bf16 %v1449_v14  ;;  %v1234_v31 = vunpack.c.l.bf16 %v1450_v19  ;;  %v1456_v23 = vld [vmem:[%s1588_s22 + $0xe8] sm:$0xff]  }
  0x42   : > { %v1366_v33 = vpack.c.bf16 %v547_v24, %v546_v21  ;;  %v548_v34 = vmax.f32 %v484_v25, 0.0  ;;  %v486_v35 = vsub.f32 %v415_v26, %v1600_v9  ;;  %v417_v36 = vmul.f32 %v1230_v27, %v1595_v1 }
  0x43   : > { %v549_v37 = vmax.f32 %v485_v28, 0.0  ;;  %v487_v38 = vsub.f32 %v416_v29, %v1600_v9  ;;  %v418_v39 = vmul.f32 %v1231_v30, %v1595_v1  ;;  %v1235_v40 = vunpack.c.h.bf16 %v1450_v19 }
  0x44   : > { %1477 = vst [vmem:[%s1625_s28 + $0x98] sm:$0xff] %v1366_v33   ;;  %v550_v41 = vmax.f32 %v486_v35, 0.0  ;;  %v488_v42 = vsub.f32 %v417_v36, %v1600_v9  ;;  %v419_v43 = vmul.f32 %v1234_v31, %v1595_v1  ;;  %v1238_v44 = vunpack.c.l.bf16 %v1451_v32 }
  0x45   : > { %v1371_v46 = vpack.c.bf16 %v549_v37, %v548_v34  ;;  %v551_v47 = vmax.f32 %v487_v38, 0.0  ;;  %v489_v48 = vsub.f32 %v418_v39, %v1600_v9  ;;  %v420_v49 = vmul.f32 %v1235_v40, %v1595_v1 }
  0x46   : > { %v552_v50 = vmax.f32 %v488_v42, 0.0  ;;  %v490_v51 = vsub.f32 %v419_v43, %v1600_v9  ;;  %v1239_v52 = vunpack.c.h.bf16 %v1451_v32  ;;  %v421_v53 = vmul.f32 %v1238_v44, %v1595_v1  ;;  %v1457_v32 = vld [vmem:[%s1588_s22 + $0xf0] sm:$0xff]  }
  0x47   : > { %1478 = vst [vmem:[%s1625_s28 + $0xa0] sm:$0xff] %v1371_v46   ;;  %v1376_v55 = vpack.c.bf16 %v551_v47, %v550_v41  ;;  %v553_v56 = vmax.f32 %v489_v48, 0.0  ;;  %v491_v57 = vsub.f32 %v420_v49, %v1600_v9  ;;  %v1242_v58 = vunpack.c.l.bf16 %v1452_v45  ;;  %v1458_v41 = vld [vmem:[%s1588_s22 + $0xf8] sm:$0xff]  }
  0x48   : > { %v554_v59 = vmax.f32 %v490_v51, 0.0  ;;  %v422_v60 = vmul.f32 %v1239_v52, %v1595_v1  ;;  %v492_v61 = vsub.f32 %v421_v53, %v1600_v9  ;;  %v1243_v62 = vunpack.c.h.bf16 %v1452_v45 }
  0x49   : > { %1479 = vst [vmem:[%s1625_s28 + $0xa8] sm:$0xff] %v1376_v55   ;;  %v1381_v0 = vpack.c.bf16 %v553_v56, %v552_v50  ;;  %v555_v2 = vmax.f32 %v491_v57, 0.0  ;;  %v423_v3 = vmul.f32 %v1242_v58, %v1595_v1  ;;  %v1246_v4 = vunpack.c.l.bf16 %v1453_v54 }
  0x4a   : > { %v493_v5 = vsub.f32 %v422_v60, %v1600_v9  ;;  %v556_v6 = vmax.f32 %v492_v61, 0.0  ;;  %v424_v7 = vmul.f32 %v1243_v62, %v1595_v1  ;;  %v1247_v8 = vunpack.c.h.bf16 %v1453_v54 }
  0x4b   : > { %1480 = vst [vmem:[%s1625_s28 + $0xb0] sm:$0xff] %v1381_v0   ;;  %v1386_v11 = vpack.c.bf16 %v555_v2, %v554_v59  ;;  %v494_v12 = vsub.f32 %v423_v3, %v1600_v9  ;;  %v425_v13 = vmul.f32 %v1246_v4, %v1595_v1  ;;  %v1250_v14 = vunpack.c.l.bf16 %v1454_v63 }
  0x4c   : > { %v557_v15 = vmax.f32 %v493_v5, 0.0  ;;  %v495_v16 = vsub.f32 %v424_v7, %v1600_v9  ;;  %v426_v17 = vmul.f32 %v1247_v8, %v1595_v1  ;;  %v1251_v18 = vunpack.c.h.bf16 %v1454_v63 }
  0x4d   : > { %1481 = vst [vmem:[%s1625_s28 + $0xb8] sm:$0xff] %v1386_v11   ;;  %v558_v19 = vmax.f32 %v494_v12, 0.0  ;;  %v496_v20 = vsub.f32 %v425_v13, %v1600_v9  ;;  %v427_v21 = vmul.f32 %v1250_v14, %v1595_v1  ;;  %v1254_v22 = vunpack.c.l.bf16 %v1455_v10 }
  0x4e   : > { %v1391_v24 = vpack.c.bf16 %v557_v15, %v556_v6  ;;  %v559_v25 = vmax.f32 %v495_v16, 0.0  ;;  %v497_v26 = vsub.f32 %v426_v17, %v1600_v9  ;;  %v428_v27 = vmul.f32 %v1251_v18, %v1595_v1 }
  0x4f   : > { %v560_v28 = vmax.f32 %v496_v20, 0.0  ;;  %v498_v29 = vsub.f32 %v427_v21, %v1600_v9  ;;  %v1255_v30 = vunpack.c.h.bf16 %v1455_v10  ;;  %v429_v31 = vmul.f32 %v1254_v22, %v1595_v1 }
  0x50   : > { %1482 = vst [vmem:[%s1625_s28 + $0xc0] sm:$0xff] %v1391_v24   ;;  %v1396_v33 = vpack.c.bf16 %v559_v25, %v558_v19  ;;  %v561_v34 = vmax.f32 %v497_v26, 0.0  ;;  %v499_v35 = vsub.f32 %v428_v27, %v1600_v9  ;;  %v1258_v36 = vunpack.c.l.bf16 %v1456_v23 }
  0x51   : > { %v562_v37 = vmax.f32 %v498_v29, 0.0  ;;  %v430_v38 = vmul.f32 %v1255_v30, %v1595_v1  ;;  %v500_v39 = vsub.f32 %v429_v31, %v1600_v9  ;;  %v1259_v40 = vunpack.c.h.bf16 %v1456_v23 }
  0x52   : > { %1483 = vst [vmem:[%s1625_s28 + $0xc8] sm:$0xff] %v1396_v33   ;;  %v1401_v42 = vpack.c.bf16 %v561_v34, %v560_v28  ;;  %v563_v43 = vmax.f32 %v499_v35, 0.0  ;;  %v431_v44 = vmul.f32 %v1258_v36, %v1595_v1  ;;  %v1262_v45 = vunpack.c.l.bf16 %v1457_v32 }
  0x53   : > { %v501_v46 = vsub.f32 %v430_v38, %v1600_v9  ;;  %v564_v47 = vmax.f32 %v500_v39, 0.0  ;;  %v432_v48 = vmul.f32 %v1259_v40, %v1595_v1  ;;  %v1263_v49 = vunpack.c.h.bf16 %v1457_v32 }
  0x54   : > { %1484 = vst [vmem:[%s1625_s28 + $0xd0] sm:$0xff] %v1401_v42   ;;  %v1406_v50 = vpack.c.bf16 %v563_v43, %v562_v37  ;;  %v502_v51 = vsub.f32 %v431_v44, %v1600_v9  ;;  %v433_v52 = vmul.f32 %v1262_v45, %v1595_v1  ;;  %v1266_v53 = vunpack.c.l.bf16 %v1458_v41 }
  0x55   : > { %v565_v54 = vmax.f32 %v501_v46, 0.0  ;;  %v503_v55 = vsub.f32 %v432_v48, %v1600_v9  ;;  %v434_v56 = vmul.f32 %v1263_v49, %v1595_v1  ;;  %v1267_v57 = vunpack.c.h.bf16 %v1458_v41 }
  0x56   : > { %1485 = vst [vmem:[%s1625_s28 + $0xd8] sm:$0xff] %v1406_v50   ;;  %v566_v58 = vmax.f32 %v502_v51, 0.0  ;;  %v504_v59 = vsub.f32 %v433_v52, %v1600_v9  ;;  %v435_v60 = vmul.f32 %v1266_v53, %v1595_v1 }
  0x57   : > { %v1411_v61 = vpack.c.bf16 %v565_v54, %v564_v47  ;;  %v567_v62 = vmax.f32 %v503_v55, 0.0  ;;  %v505_v63 = vsub.f32 %v434_v56, %v1600_v9  ;;  %v436_v0 = vmul.f32 %v1267_v57, %v1595_v1 }
  0x58   : > { %v568_v2 = vmax.f32 %v504_v59, 0.0  ;;  %v506_v3 = vsub.f32 %v435_v60, %v1600_v9 }
  0x59   : > { %1486 = vst [vmem:[%s1625_s28 + $0xe0] sm:$0xff] %v1411_v61   ;;  %v1416_v4 = vpack.c.bf16 %v567_v62, %v566_v58  ;;  %v569_v5 = vmax.f32 %v505_v63, 0.0  ;;  %v507_v6 = vsub.f32 %v436_v0, %v1600_v9 }
  0x5a   : > { %v570_v7 = vmax.f32 %v506_v3, 0.0 }
  0x5b   : > { %1487 = vst [vmem:[%s1625_s28 + $0xe8] sm:$0xff] %v1416_v4   ;;  %v1421_v8 = vpack.c.bf16 %v569_v5, %v568_v2  ;;  %v571_v10 = vmax.f32 %v507_v6, 0.0 }
  0x5d   : > { %1488 = vst [vmem:[%s1625_s28 + $0xf0] sm:$0xff] %v1421_v8   ;;  %v1426_v11 = vpack.c.bf16 %v571_v10, %v570_v7 }
  0x5f   : > { %1489 = vst [vmem:[%s1625_s28 + $0xf8] sm:$0xff] %v1426_v11  }
  0x60 PF: > { %s13_s14 = sadd.s32 1, %s1536_s14   ;;  %s1810_s12 = smov %s1532_s13 }
  0x61   : > { %p10_p5 = scmp.ge.s32.totalorder %s13_s14, 4   ;;  %s1811_s13 = smov %s1813_s15 }
  0x63   :  { %12 = sbr.rel (!%p10_p5) target bundleno = 2 (0x2), region = 68 }

</bundles_post_ra>
